<compile_context>
chip_gen: v5e
topology: v5e:2x2
jax: 0.10.0
libtpu: 0.0.40
codegen_flags: <defaults>
</compile_context>

<pallas_src>
import functools
import math

import jax
import jax.numpy as jnp
from jax.experimental import pallas as pl
from jax.experimental.pallas import tpu as pltpu

LN_EPS = 1e-12  # HF BertConfig.layer_norm_eps default

# Packing order of the per-layer (H,)-sized vectors inside the (L, 9, H) buffer.
_VEC_ORDER = ("bq", "bk", "bv", "bo", "g1", "be1", "b2", "g2", "be2")


def _layer_norm(x, gamma, beta):
    mu = jnp.mean(x, axis=-1, keepdims=True)
    var = jnp.mean((x - mu) * (x - mu), axis=-1, keepdims=True)
    return (x - mu) * jax.lax.rsqrt(var + LN_EPS) * gamma + beta


def _gelu_tanh(x):
    # tanh-form GELU (EUP tanh); <= ~3e-4 abs deviation from exact erf GELU.
    c = math.sqrt(2.0 / math.pi)
    return 0.5 * x * (1.0 + jnp.tanh(c * (x + 0.044715 * x * x * x)))


# --------------------------- fused encoder kernel ------------------------------
def _fused_encoder_kernel(num_heads, head_dim, batch, seq, has_mask, *refs):
    if has_mask:
        (x_ref, mask_ref, wqkv_ref, wo_ref, wi_ref, w2_ref,
         vec_ref, bi_ref, out_ref, h1_ref) = refs
    else:
        (x_ref, wqkv_ref, wo_ref, wi_ref, w2_ref,
         vec_ref, bi_ref, out_ref, h1_ref) = refs
        mask_ref = None

    layer = pl.program_id(0)

    # Layer 0: seed the VMEM-resident carry (out block, constant index_map).
    @pl.when(layer == 0)
    def _():
        out_ref[...] = x_ref[...]

    f32, bf16 = jnp.float32, jnp.bfloat16
    H = num_heads * head_dim

    # Per-layer weights (bf16) and packed vectors (f32) — hoisted per grid step.
    wqkv = wqkv_ref[0]                                  # (H, 3H) bf16
    wi, w2 = wi_ref[0], w2_ref[0]                       # (H, I) / (I, H) bf16
    vec = vec_ref[0]                                    # (9, H) f32
    bq, bk, bv, bo = vec[0:1, :], vec[1:2, :], vec[2:3, :], vec[3:4, :]
    g1, be1 = vec[4:5, :], vec[5:6, :]
    b2, g2, be2 = vec[6:7, :], vec[7:8, :], vec[8:9, :]
    bi = bi_ref[0]                                      # (1, I) f32

    scale = 1.0 / math.sqrt(head_dim)

    x_all = out_ref[...]                                # (B*S, H) f32 carry
    x16 = x_all.astype(bf16)

    # --- Fused QKV projection: one MXU matmul over all B*S rows.
    qkv = jnp.dot(x16, wqkv, preferred_element_type=f32)        # (B*S, 3H)
    q16 = ((qkv[:, 0:H] + bq) * scale).astype(bf16)             # scale folded
    k16 = (qkv[:, H:2 * H] + bk).astype(bf16)
    v16 = (qkv[:, 2 * H:3 * H] + bv).astype(bf16)

    # --- Self-attention (per batch, per head; B and NH are small, static unroll)
    for b in range(batch):
        r0, r1 = b * seq, (b + 1) * seq
        xb = x_all[r0:r1, :]                                    # (S, H) f32
        if has_mask:
            mb = mask_ref[b]                                    # (1, S)

        # Attention output accumulator (lane-dense (S, H) f32); W_o is applied
        # per head and accumulated -> no concatenate of head contexts.
        acc = jnp.zeros((seq, H), f32)
        for n in range(num_heads):
            c0, c1 = n * head_dim, (n + 1) * head_dim
            qs, ks, vs = q16[r0:r1, c0:c1], k16[r0:r1, c0:c1], v16[r0:r1, c0:c1]
            s = jax.lax.dot_general(qs, ks, (((1,), (1,)), ((), ())),
                                    preferred_element_type=f32)     # (S, S)
            if has_mask:
                s = s + mb
            s = s - jnp.max(s, axis=-1, keepdims=True)
            e = jnp.exp(s)
            p = e * pl.reciprocal(jnp.sum(e, axis=-1, keepdims=True),
                                  approx=True)
            ctx = jnp.dot(p.astype(bf16), vs,
                          preferred_element_type=f32)               # (S, hd)
            acc = acc + jnp.dot(ctx.astype(bf16), wo_ref[0, n],
                                preferred_element_type=f32)         # (S, H)

        # --- BertSelfOutput: bias + residual + LayerNorm (f32) -> VMEM scratch
        h1_ref[pl.ds(r0, seq), :] = _layer_norm(acc + bo + xb, g1, be1)

    # --- FFN over the full (B*S, H) slab: batched across the batch dim.
    h1 = h1_ref[...]                                             # (B*S, H) f32
    # BertIntermediate: dense + GELU (tanh form, EUP)
    inter = _gelu_tanh(jnp.dot(h1.astype(bf16), wi,
                               preferred_element_type=f32) + bi)
    # BertOutput: dense + residual + LayerNorm (f32)
    out = jnp.dot(inter.astype(bf16), w2, preferred_element_type=f32) + b2
    out_ref[...] = _layer_norm(out + h1, g2, be2)


# ------------------------------ wrapper ----------------------------------------
def _prepare_params(layer_params, num_heads):
    """Stack per-layer params -> [L, ...], bf16 matrices, packed f32 vectors."""
    L = len(layer_params)
    H = layer_params[0]["wq"].shape[0]
    I = layer_params[0]["wi"].shape[1]
    hd = H // num_heads

    def stack_mat(name):
        return jnp.stack([p[name] for p in layer_params]).astype(jnp.bfloat16)

    wqkv = jnp.concatenate(
        [stack_mat("wq"), stack_mat("wk"), stack_mat("wv")], axis=-1)  # (L,H,3H)
    vecs = jnp.stack([
        jnp.stack([p[n].reshape(H) for n in _VEC_ORDER]) for p in layer_params
    ]).astype(jnp.float32)                                        # (L, 9, H)
    bi = jnp.stack([p["bi"].reshape(1, I) for p in layer_params]
                   ).astype(jnp.float32)                          # (L, 1, I)
    return {
        "wqkv": wqkv,
        "wo": stack_mat("wo").reshape(L, num_heads, hd, H),       # per-head W_o
        "wi": stack_mat("wi"), "w2": stack_mat("w2"),
        "vecs": vecs, "bi": bi,
    }


def narrowbert_encoder(hidden_states, attention_mask, layer_params, num_heads):
    """NarrowBertEncoder.forward (narrow=False): returns last_hidden_state."""
    B, S, H = hidden_states.shape
    assert H % num_heads == 0
    hd = H // num_heads
    P = _prepare_params(layer_params, num_heads)
    L = P["wqkv"].shape[0]
    I = P["wi"].shape[2]
    has_mask = attention_mask is not None

    x2d = hidden_states.reshape(B * S, H)   # lane-dense 2-D carry layout
    kernel = functools.partial(_fused_encoder_kernel, num_heads, hd, B, S,
                               has_mask)

    in_specs = [pl.BlockSpec((B * S, H), lambda l: (0, 0))]      # x (constant)
    inputs = [x2d]
    if has_mask:
        in_specs.append(pl.BlockSpec((B, 1, S), lambda l: (0, 0, 0)))
        inputs.append(attention_mask)
    in_specs += [
        pl.BlockSpec((1, H, 3 * H), lambda l: (l, 0, 0)),            # wqkv
        pl.BlockSpec((1, num_heads, hd, H), lambda l: (l, 0, 0, 0)),  # wo heads
        pl.BlockSpec((1, H, I), lambda l: (l, 0, 0)),                # wi
        pl.BlockSpec((1, I, H), lambda l: (l, 0, 0)),                # w2
        pl.BlockSpec((1, 9, H), lambda l: (l, 0, 0)),                # packed vecs
        pl.BlockSpec((1, 1, I), lambda l: (l, 0, 0)),                # bi
    ]
    inputs += [P["wqkv"], P["wo"], P["wi"], P["w2"], P["vecs"], P["bi"]]

    out2d = pl.pallas_call(
        kernel,
        out_shape=jax.ShapeDtypeStruct((B * S, H), hidden_states.dtype),
        grid=(L,),
        in_specs=in_specs,
        out_specs=pl.BlockSpec((B * S, H), lambda l: (0, 0)),    # carry/accum
        scratch_shapes=[pltpu.VMEM((B * S, H), jnp.float32)],    # h1 scratch
        compiler_params=pltpu.CompilerParams(
            dimension_semantics=("arbitrary",),   # layers are sequential
            vmem_limit_bytes=48 * 1024 * 1024,
        ),
    )(*inputs)
    return out2d.reshape(B, S, H)


# ---------------------- pure-JAX references (for checking) ---------------------
def _mixed_ref_layer(x, mask, p, num_heads):
    """Mirrors the kernel's precision policy (bf16 matmul inputs, f32 accum)."""
    B, S, H = x.shape
    hd = H // num_heads
    f32, bf16 = jnp.float32, jnp.bfloat16

    def mm(a, w):
        return jnp.einsum("...k,kn->...n", a.astype(bf16), w.astype(bf16),
                          preferred_element_type=f32)

    q = (mm(x, p["wq"]) + p["bq"]) / math.sqrt(hd)
    k = mm(x, p["wk"]) + p["bk"]
    v = mm(x, p["wv"]) + p["bv"]
    q = q.reshape(B, S, num_heads, hd).astype(bf16)
    k = k.reshape(B, S, num_heads, hd).astype(bf16)
    v = v.reshape(B, S, num_heads, hd).astype(bf16)
    s = jnp.einsum("bqnd,bknd->bnqk", q, k, preferred_element_type=f32)
    if mask is not None:
        s = s + mask[:, None, :, :]
    s = s - jnp.max(s, axis=-1, keepdims=True)
    e = jnp.exp(s)
    prob = e / jnp.sum(e, axis=-1, keepdims=True)
    ctx = jnp.einsum("bnqk,bknd->bqnd", prob.astype(bf16), v,
                     preferred_element_type=f32).reshape(B, S, H)
    h1 = _layer_norm(mm(ctx, p["wo"]) + p["bo"] + x, p["g1"], p["be1"])
    inter = _gelu_tanh(mm(h1, p["wi"]) + p["bi"])
    out = mm(inter, p["w2"]) + p["b2"]
    return _layer_norm(out + h1, p["g2"], p["be2"])


def _f32_ref_layer(x, mask, p, num_heads):
    """Exact-semantics reference: f32 activations, exact softmax & erf GELU."""
    B, S, H = x.shape
    hd = H // num_heads
    f32 = jnp.float32

    def mm(a, w, b):
        return jnp.einsum("...k,kn->...n", a, w.astype(f32)) + b

    q = mm(x, p["wq"], p["bq"]) / math.sqrt(hd)
    k = mm(x, p["wk"], p["bk"])
    v = mm(x, p["wv"], p["bv"])
    q = q.reshape(B, S, num_heads, hd)
    k = k.reshape(B, S, num_heads, hd)
    v = v.reshape(B, S, num_heads, hd)
    s = jnp.einsum("bqnd,bknd->bnqk", q, k)
    if mask is not None:
        s = s + mask[:, None, :, :]
    prob = jax.nn.softmax(s, axis=-1)
    ctx = jnp.einsum("bnqk,bknd->bqnd", prob, v).reshape(B, S, H)
    h1 = _layer_norm(mm(ctx, p["wo"], p["bo"]) + x, p["g1"], p["be1"])
    inter = jax.nn.gelu(mm(h1, p["wi"], p["bi"]), approximate=False)
    return _layer_norm(mm(inter, p["w2"], p["b2"]) + h1, p["g2"], p["be2"])


def _run_reference(layer_fn, x, mask, layer_params, num_heads):
    for p in layer_params:
        x = layer_fn(x, mask, p, num_heads)
    return x


# --------------------------------- driver --------------------------------------
def _init_layer_params(key, hidden, intermediate):
    ks = jax.random.split(key, 16)
    std = 0.02
    f32, bf16 = jnp.float32, jnp.bfloat16

    def w(k, shp):      # weight matrices stored in bf16 (streamed precision)
        return (jax.random.normal(k, shp, f32) * std).astype(bf16)

    def b(k, n):        # biases / LN params stay f32
        return jax.random.normal(k, (n,), f32) * 0.05

    return {
        "wq": w(ks[0], (hidden, hidden)), "bq": b(ks[1], hidden),
        "wk": w(ks[2], (hidden, hidden)), "bk": b(ks[3], hidden),
        "wv": w(ks[4], (hidden, hidden)), "bv": b(ks[5], hidden),
        "wo": w(ks[6], (hidden, hidden)), "bo": b(ks[7], hidden),
        "g1": 1.0 + b(ks[8], hidden), "be1": b(ks[9], hidden),
        "wi": w(ks[10], (hidden, intermediate)), "bi": b(ks[11], intermediate),
        "w2": w(ks[12], (intermediate, hidden)), "b2": b(ks[13], hidden),
        "g2": 1.0 + b(ks[14], hidden), "be2": b(ks[15], hidden),
    }


if __name__ == "__main__":
    # Small TPU-friendly config: batch=2, seq=8, hidden=128, heads=4 (hd=32),
    # intermediate=512, full_length_layers=2 (encoder built with narrow=False).
    B, S, H, NH, I, N_LAYERS = 2, 8, 128, 4, 512, 2

    root = jax.random.PRNGKey(0)
    k_x, k_p = jax.random.split(root)
    hidden_states = jax.random.normal(k_x, (B, S, H), jnp.float32)

    # Additive padding mask (HF extended-mask semantics): 0 keep, -1e9 drop.
    lengths = jnp.array([S, 5], jnp.int32)
    key_pos = jnp.arange(S)[None, :]
    attention_mask = jnp.where(key_pos < lengths[:, None], 0.0, -1e9
                               ).astype(jnp.float32)[:, None, :]   # (B, 1, S)

    layer_keys = jax.random.split(k_p, N_LAYERS)
    layer_params = [_init_layer_params(k, H, I) for k in layer_keys]

    # --- masked path ---
    out = narrowbert_encoder(hidden_states, attention_mask, layer_params, NH)
    out = jax.block_until_ready(out)
    assert out.shape == (B, S, H)

    ref_mixed = _run_reference(_mixed_ref_layer, hidden_states, attention_mask,
                               layer_params, NH)
    ref_f32 = _run_reference(_f32_ref_layer, hidden_states, attention_mask,
                             layer_params, NH)
    assert jnp.allclose(out, ref_mixed, rtol=1e-2, atol=1e-2), \
        "mismatch vs matched-precision reference"
    assert jnp.allclose(out, ref_f32, rtol=5e-2, atol=5e-2), \
        "mismatch vs exact f32 reference"

    # --- attention_mask=None path (the module's forward default) ---
    out_nm = narrowbert_encoder(hidden_states, None, layer_params, NH)
    out_nm = jax.block_until_ready(out_nm)
    ref_nm = _run_reference(_mixed_ref_layer, hidden_states, None,
                            layer_params, NH)
    assert jnp.allclose(out_nm, ref_nm, rtol=1e-2, atol=1e-2), \
        "mismatch vs reference (mask=None path)"

    print("KERNEL_OK")
</pallas_src>

<mosaic_0001>
module attributes {stable_mosaic.version = 11 : i64} {
  func.func @_fused_encoder_kernel(%arg0: i32, %arg1: memref<16x128xf32, #tpu.memory_space<vmem>>, %arg2: memref<2x1x8xf32, #tpu.memory_space<vmem>>, %arg3: memref<1x128x384xbf16, #tpu.memory_space<vmem>>, %arg4: memref<1x4x32x128xbf16, #tpu.memory_space<vmem>>, %arg5: memref<1x128x512xbf16, #tpu.memory_space<vmem>>, %arg6: memref<1x512x128xbf16, #tpu.memory_space<vmem>>, %arg7: memref<1x9x128xf32, #tpu.memory_space<vmem>>, %arg8: memref<1x1x512xf32, #tpu.memory_space<vmem>>, %arg9: memref<16x128xf32, #tpu.memory_space<vmem>>, %arg10: memref<16x128xf32, #tpu.memory_space<vmem>>) attributes {dimension_semantics = [#tpu.dimension_semantics<arbitrary>], iteration_bounds = array<i64: 2>, scalar_prefetch = 0 : i64, scratch_operands = 1 : i64, tpu.core_type = #tpu.core_type<tc>, window_params = [{pipeline_mode = #tpu.pipeline_mode<synchronous>, transform_indices = @transform_0, window_bounds = array<i64: 16, 128>}, {pipeline_mode = #tpu.pipeline_mode<synchronous>, transform_indices = @transform_1, window_bounds = array<i64: 2, 1, 8>}, {transform_indices = @transform_2, window_bounds = array<i64: 1, 128, 384>}, {transform_indices = @transform_3, window_bounds = array<i64: 1, 4, 32, 128>}, {transform_indices = @transform_4, window_bounds = array<i64: 1, 128, 512>}, {transform_indices = @transform_5, window_bounds = array<i64: 1, 512, 128>}, {transform_indices = @transform_6, window_bounds = array<i64: 1, 9, 128>}, {transform_indices = @transform_7, window_bounds = array<i64: 1, 1, 512>}, {pipeline_mode = #tpu.pipeline_mode<synchronous>, transform_indices = @transform_8, window_bounds = array<i64: 16, 128>}]} {
    %c0_i32 = arith.constant 0 : i32
    %0 = arith.cmpi eq, %arg0, %c0_i32 : i32
    %1 = arith.extui %0 : i1 to i32
    %c0_i32_0 = arith.constant 0 : i32
    %2 = arith.cmpi ne, %1, %c0_i32_0 : i32
    scf.if %2 {
      %c0_123 = arith.constant 0 : index
      %c0_124 = arith.constant 0 : index
      %335 = vector.load %arg1[%c0_123, %c0_124] : memref<16x128xf32, #tpu.memory_space<vmem>>, vector<16x128xf32>
      %c0_125 = arith.constant 0 : index
      %c0_126 = arith.constant 0 : index
      %336 = vector.load %arg9[%c0_125, %c0_126] : memref<16x128xf32, #tpu.memory_space<vmem>>, vector<16x128xf32>
      tpu.vector_store %arg9[%c0_125, %c0_126], %335 {strides = array<i32>} : memref<16x128xf32, #tpu.memory_space<vmem>>, vector<16x128xf32>,
    } else {
    }
    %c0 = arith.constant 0 : index
    %c0_1 = arith.constant 0 : index
    %c0_2 = arith.constant 0 : index
    %3 = vector.load %arg3[%c0, %c0_1, %c0_2] : memref<1x128x384xbf16, #tpu.memory_space<vmem>>, vector<1x128x384xbf16>
    %4 = vector.shape_cast %3 : vector<1x128x384xbf16> to vector<128x384xbf16>
    %c0_3 = arith.constant 0 : index
    %c0_4 = arith.constant 0 : index
    %c0_5 = arith.constant 0 : index
    %5 = vector.load %arg5[%c0_3, %c0_4, %c0_5] : memref<1x128x512xbf16, #tpu.memory_space<vmem>>, vector<1x128x512xbf16>
    %6 = vector.shape_cast %5 : vector<1x128x512xbf16> to vector<128x512xbf16>
    %c0_6 = arith.constant 0 : index
    %c0_7 = arith.constant 0 : index
    %c0_8 = arith.constant 0 : index
    %7 = vector.load %arg6[%c0_6, %c0_7, %c0_8] : memref<1x512x128xbf16, #tpu.memory_space<vmem>>, vector<1x512x128xbf16>
    %8 = vector.shape_cast %7 : vector<1x512x128xbf16> to vector<512x128xbf16>
    %c0_9 = arith.constant 0 : index
    %c0_10 = arith.constant 0 : index
    %c0_11 = arith.constant 0 : index
    %9 = vector.load %arg7[%c0_9, %c0_10, %c0_11] : memref<1x9x128xf32, #tpu.memory_space<vmem>>, vector<1x9x128xf32>
    %10 = vector.shape_cast %9 : vector<1x9x128xf32> to vector<9x128xf32>
    %11 = vector.extract_strided_slice %10 {offsets = [0, 0], sizes = [1, 128], strides = [1, 1]} : vector<9x128xf32> to vector<1x128xf32>
    %12 = vector.extract_strided_slice %10 {offsets = [1, 0], sizes = [1, 128], strides = [1, 1]} : vector<9x128xf32> to vector<1x128xf32>
    %13 = vector.extract_strided_slice %10 {offsets = [2, 0], sizes = [1, 128], strides = [1, 1]} : vector<9x128xf32> to vector<1x128xf32>
    %14 = vector.extract_strided_slice %10 {offsets = [3, 0], sizes = [1, 128], strides = [1, 1]} : vector<9x128xf32> to vector<1x128xf32>
    %15 = vector.extract_strided_slice %10 {offsets = [4, 0], sizes = [1, 128], strides = [1, 1]} : vector<9x128xf32> to vector<1x128xf32>
    %16 = vector.extract_strided_slice %10 {offsets = [5, 0], sizes = [1, 128], strides = [1, 1]} : vector<9x128xf32> to vector<1x128xf32>
    %17 = vector.extract_strided_slice %10 {offsets = [6, 0], sizes = [1, 128], strides = [1, 1]} : vector<9x128xf32> to vector<1x128xf32>
    %18 = vector.extract_strided_slice %10 {offsets = [7, 0], sizes = [1, 128], strides = [1, 1]} : vector<9x128xf32> to vector<1x128xf32>
    %19 = vector.extract_strided_slice %10 {offsets = [8, 0], sizes = [1, 128], strides = [1, 1]} : vector<9x128xf32> to vector<1x128xf32>
    %c0_12 = arith.constant 0 : index
    %c0_13 = arith.constant 0 : index
    %c0_14 = arith.constant 0 : index
    %20 = vector.load %arg8[%c0_12, %c0_13, %c0_14] : memref<1x1x512xf32, #tpu.memory_space<vmem>>, vector<1x1x512xf32>
    %21 = vector.shape_cast %20 : vector<1x1x512xf32> to vector<1x512xf32>
    %c0_15 = arith.constant 0 : index
    %c0_16 = arith.constant 0 : index
    %22 = vector.load %arg9[%c0_15, %c0_16] : memref<16x128xf32, #tpu.memory_space<vmem>>, vector<16x128xf32>
    %23 = arith.truncf %22 : vector<16x128xf32> to vector<16x128xbf16>
    %cst = arith.constant dense<0.000000e+00> : vector<16x384xf32>
    %24 = tpu.matmul %23, %4, %cst {dimension_numbers = #tpu.dot_dimension_numbers<[1], [0], [0], [1], [0, 0, 1, 1], [], []>} : vector<16x128xbf16>, vector<128x384xbf16>, vector<16x384xf32> -> vector<16x384xf32>
    %25 = vector.extract_strided_slice %24 {offsets = [0, 0], sizes = [16, 128], strides = [1, 1]} : vector<16x384xf32> to vector<16x128xf32>
    %26 = vector.broadcast %11 : vector<1x128xf32> to vector<16x128xf32>
    %27 = arith.addf %25, %26 : vector<16x128xf32>
    %cst_17 = arith.constant 0.176776692 : f32
    %28 = vector.broadcast %cst_17 : f32 to vector<16x128xf32>
    %29 = arith.mulf %27, %28 : vector<16x128xf32>
    %30 = arith.truncf %29 : vector<16x128xf32> to vector<16x128xbf16>
    %31 = vector.extract_strided_slice %24 {offsets = [0, 128], sizes = [16, 128], strides = [1, 1]} : vector<16x384xf32> to vector<16x128xf32>
    %32 = vector.broadcast %12 : vector<1x128xf32> to vector<16x128xf32>
    %33 = arith.addf %31, %32 : vector<16x128xf32>
    %34 = arith.truncf %33 : vector<16x128xf32> to vector<16x128xbf16>
    %35 = vector.extract_strided_slice %24 {offsets = [0, 256], sizes = [16, 128], strides = [1, 1]} : vector<16x384xf32> to vector<16x128xf32>
    %36 = vector.broadcast %13 : vector<1x128xf32> to vector<16x128xf32>
    %37 = arith.addf %35, %36 : vector<16x128xf32>
    %38 = arith.truncf %37 : vector<16x128xf32> to vector<16x128xbf16>
    %39 = vector.extract_strided_slice %22 {offsets = [0, 0], sizes = [8, 128], strides = [1, 1]} : vector<16x128xf32> to vector<8x128xf32>
    %c0_18 = arith.constant 0 : index
    %c0_19 = arith.constant 0 : index
    %c0_20 = arith.constant 0 : index
    %40 = vector.load %arg2[%c0_18, %c0_19, %c0_20] : memref<2x1x8xf32, #tpu.memory_space<vmem>>, vector<1x1x8xf32>
    %41 = vector.shape_cast %40 : vector<1x1x8xf32> to vector<1x8xf32>
    %cst_21 = arith.constant 0.000000e+00 : f32
    %42 = vector.broadcast %cst_21 : f32 to vector<8x128xf32>
    %43 = vector.extract_strided_slice %30 {offsets = [0, 0], sizes = [8, 32], strides = [1, 1]} : vector<16x128xbf16> to vector<8x32xbf16>
    %44 = vector.extract_strided_slice %34 {offsets = [0, 0], sizes = [8, 32], strides = [1, 1]} : vector<16x128xbf16> to vector<8x32xbf16>
    %45 = vector.extract_strided_slice %38 {offsets = [0, 0], sizes = [8, 32], strides = [1, 1]} : vector<16x128xbf16> to vector<8x32xbf16>
    %cst_22 = arith.constant dense<0.000000e+00> : vector<8x8xf32>
    %46 = tpu.matmul %43, %44, %cst_22 {dimension_numbers = #tpu.dot_dimension_numbers<[1], [1], [0], [0], [0, 0, 1, 0], [], []>} : vector<8x32xbf16>, vector<8x32xbf16>, vector<8x8xf32> -> vector<8x8xf32>
    %47 = vector.broadcast %41 : vector<1x8xf32> to vector<8x8xf32>
    %48 = arith.addf %46, %47 : vector<8x8xf32>
    %cst_23 = arith.constant dense<0xFF800000> : vector<8xf32>
    %49 = vector.multi_reduction <maximumf>, %48, %cst_23 [1] : vector<8x8xf32> to vector<8xf32>
    %50 = vector.shape_cast %49 : vector<8xf32> to vector<8x1xf32>
    %51 = vector.broadcast %50 : vector<8x1xf32> to vector<8x8xf32>
    %52 = arith.subf %48, %51 : vector<8x8xf32>
    %53 = math.exp %52 : vector<8x8xf32>
    %cst_24 = arith.constant dense<0.000000e+00> : vector<8xf32>
    %54 = vector.multi_reduction <add>, %53, %cst_24 [1] : vector<8x8xf32> to vector<8xf32>
    %55 = vector.shape_cast %54 : vector<8xf32> to vector<8x1xf32>
    %56 = tpu.reciprocal %55 {approx = true} : vector<8x1xf32> -> vector<8x1xf32>
    %57 = vector.broadcast %56 : vector<8x1xf32> to vector<8x8xf32>
    %58 = arith.mulf %53, %57 : vector<8x8xf32>
    %59 = arith.truncf %58 : vector<8x8xf32> to vector<8x8xbf16>
    %cst_25 = arith.constant dense<0.000000e+00> : vector<8x32xf32>
    %60 = tpu.matmul %59, %45, %cst_25 {dimension_numbers = #tpu.dot_dimension_numbers<[1], [0], [0], [1], [0, 0, 1, 1], [], []>} : vector<8x8xbf16>, vector<8x32xbf16>, vector<8x32xf32> -> vector<8x32xf32>
    %61 = arith.truncf %60 : vector<8x32xf32> to vector<8x32xbf16>
    %c0_26 = arith.constant 0 : index
    %c0_27 = arith.constant 0 : index
    %c0_28 = arith.constant 0 : index
    %c0_29 = arith.constant 0 : index
    %62 = vector.load %arg4[%c0_26, %c0_27, %c0_28, %c0_29] : memref<1x4x32x128xbf16, #tpu.memory_space<vmem>>, vector<1x1x32x128xbf16>
    %63 = vector.shape_cast %62 : vector<1x1x32x128xbf16> to vector<32x128xbf16>
    %cst_30 = arith.constant dense<0.000000e+00> : vector<8x128xf32>
    %64 = tpu.matmul %61, %63, %cst_30 {dimension_numbers = #tpu.dot_dimension_numbers<[1], [0], [0], [1], [0, 0, 1, 1], [], []>} : vector<8x32xbf16>, vector<32x128xbf16>, vector<8x128xf32> -> vector<8x128xf32>
    %65 = arith.addf %42, %64 : vector<8x128xf32>
    %66 = vector.extract_strided_slice %30 {offsets = [0, 32], sizes = [8, 32], strides = [1, 1]} : vector<16x128xbf16> to vector<8x32xbf16>
    %67 = vector.extract_strided_slice %34 {offsets = [0, 32], sizes = [8, 32], strides = [1, 1]} : vector<16x128xbf16> to vector<8x32xbf16>
    %68 = vector.extract_strided_slice %38 {offsets = [0, 32], sizes = [8, 32], strides = [1, 1]} : vector<16x128xbf16> to vector<8x32xbf16>
    %cst_31 = arith.constant dense<0.000000e+00> : vector<8x8xf32>
    %69 = tpu.matmul %66, %67, %cst_31 {dimension_numbers = #tpu.dot_dimension_numbers<[1], [1], [0], [0], [0, 0, 1, 0], [], []>} : vector<8x32xbf16>, vector<8x32xbf16>, vector<8x8xf32> -> vector<8x8xf32>
    %70 = vector.broadcast %41 : vector<1x8xf32> to vector<8x8xf32>
    %71 = arith.addf %69, %70 : vector<8x8xf32>
    %cst_32 = arith.constant dense<0xFF800000> : vector<8xf32>
    %72 = vector.multi_reduction <maximumf>, %71, %cst_32 [1] : vector<8x8xf32> to vector<8xf32>
    %73 = vector.shape_cast %72 : vector<8xf32> to vector<8x1xf32>
    %74 = vector.broadcast %73 : vector<8x1xf32> to vector<8x8xf32>
    %75 = arith.subf %71, %74 : vector<8x8xf32>
    %76 = math.exp %75 : vector<8x8xf32>
    %cst_33 = arith.constant dense<0.000000e+00> : vector<8xf32>
    %77 = vector.multi_reduction <add>, %76, %cst_33 [1] : vector<8x8xf32> to vector<8xf32>
    %78 = vector.shape_cast %77 : vector<8xf32> to vector<8x1xf32>
    %79 = tpu.reciprocal %78 {approx = true} : vector<8x1xf32> -> vector<8x1xf32>
    %80 = vector.broadcast %79 : vector<8x1xf32> to vector<8x8xf32>
    %81 = arith.mulf %76, %80 : vector<8x8xf32>
    %82 = arith.truncf %81 : vector<8x8xf32> to vector<8x8xbf16>
    %cst_34 = arith.constant dense<0.000000e+00> : vector<8x32xf32>
    %83 = tpu.matmul %82, %68, %cst_34 {dimension_numbers = #tpu.dot_dimension_numbers<[1], [0], [0], [1], [0, 0, 1, 1], [], []>} : vector<8x8xbf16>, vector<8x32xbf16>, vector<8x32xf32> -> vector<8x32xf32>
    %84 = arith.truncf %83 : vector<8x32xf32> to vector<8x32xbf16>
    %c0_35 = arith.constant 0 : index
    %c1 = arith.constant 1 : index
    %c0_36 = arith.constant 0 : index
    %c0_37 = arith.constant 0 : index
    %85 = vector.load %arg4[%c0_35, %c1, %c0_36, %c0_37] : memref<1x4x32x128xbf16, #tpu.memory_space<vmem>>, vector<1x1x32x128xbf16>
    %86 = vector.shape_cast %85 : vector<1x1x32x128xbf16> to vector<32x128xbf16>
    %cst_38 = arith.constant dense<0.000000e+00> : vector<8x128xf32>
    %87 = tpu.matmul %84, %86, %cst_38 {dimension_numbers = #tpu.dot_dimension_numbers<[1], [0], [0], [1], [0, 0, 1, 1], [], []>} : vector<8x32xbf16>, vector<32x128xbf16>, vector<8x128xf32> -> vector<8x128xf32>
    %88 = arith.addf %65, %87 : vector<8x128xf32>
    %89 = vector.extract_strided_slice %30 {offsets = [0, 64], sizes = [8, 32], strides = [1, 1]} : vector<16x128xbf16> to vector<8x32xbf16>
    %90 = vector.extract_strided_slice %34 {offsets = [0, 64], sizes = [8, 32], strides = [1, 1]} : vector<16x128xbf16> to vector<8x32xbf16>
    %91 = vector.extract_strided_slice %38 {offsets = [0, 64], sizes = [8, 32], strides = [1, 1]} : vector<16x128xbf16> to vector<8x32xbf16>
    %cst_39 = arith.constant dense<0.000000e+00> : vector<8x8xf32>
    %92 = tpu.matmul %89, %90, %cst_39 {dimension_numbers = #tpu.dot_dimension_numbers<[1], [1], [0], [0], [0, 0, 1, 0], [], []>} : vector<8x32xbf16>, vector<8x32xbf16>, vector<8x8xf32> -> vector<8x8xf32>
    %93 = vector.broadcast %41 : vector<1x8xf32> to vector<8x8xf32>
    %94 = arith.addf %92, %93 : vector<8x8xf32>
    %cst_40 = arith.constant dense<0xFF800000> : vector<8xf32>
    %95 = vector.multi_reduction <maximumf>, %94, %cst_40 [1] : vector<8x8xf32> to vector<8xf32>
    %96 = vector.shape_cast %95 : vector<8xf32> to vector<8x1xf32>
    %97 = vector.broadcast %96 : vector<8x1xf32> to vector<8x8xf32>
    %98 = arith.subf %94, %97 : vector<8x8xf32>
    %99 = math.exp %98 : vector<8x8xf32>
    %cst_41 = arith.constant dense<0.000000e+00> : vector<8xf32>
    %100 = vector.multi_reduction <add>, %99, %cst_41 [1] : vector<8x8xf32> to vector<8xf32>
    %101 = vector.shape_cast %100 : vector<8xf32> to vector<8x1xf32>
    %102 = tpu.reciprocal %101 {approx = true} : vector<8x1xf32> -> vector<8x1xf32>
    %103 = vector.broadcast %102 : vector<8x1xf32> to vector<8x8xf32>
    %104 = arith.mulf %99, %103 : vector<8x8xf32>
    %105 = arith.truncf %104 : vector<8x8xf32> to vector<8x8xbf16>
    %cst_42 = arith.constant dense<0.000000e+00> : vector<8x32xf32>
    %106 = tpu.matmul %105, %91, %cst_42 {dimension_numbers = #tpu.dot_dimension_numbers<[1], [0], [0], [1], [0, 0, 1, 1], [], []>} : vector<8x8xbf16>, vector<8x32xbf16>, vector<8x32xf32> -> vector<8x32xf32>
    %107 = arith.truncf %106 : vector<8x32xf32> to vector<8x32xbf16>
    %c0_43 = arith.constant 0 : index
    %c2 = arith.constant 2 : index
    %c0_44 = arith.constant 0 : index
    %c0_45 = arith.constant 0 : index
    %108 = vector.load %arg4[%c0_43, %c2, %c0_44, %c0_45] : memref<1x4x32x128xbf16, #tpu.memory_space<vmem>>, vector<1x1x32x128xbf16>
    %109 = vector.shape_cast %108 : vector<1x1x32x128xbf16> to vector<32x128xbf16>
    %cst_46 = arith.constant dense<0.000000e+00> : vector<8x128xf32>
    %110 = tpu.matmul %107, %109, %cst_46 {dimension_numbers = #tpu.dot_dimension_numbers<[1], [0], [0], [1], [0, 0, 1, 1], [], []>} : vector<8x32xbf16>, vector<32x128xbf16>, vector<8x128xf32> -> vector<8x128xf32>
    %111 = arith.addf %88, %110 : vector<8x128xf32>
    %112 = vector.extract_strided_slice %30 {offsets = [0, 96], sizes = [8, 32], strides = [1, 1]} : vector<16x128xbf16> to vector<8x32xbf16>
    %113 = vector.extract_strided_slice %34 {offsets = [0, 96], sizes = [8, 32], strides = [1, 1]} : vector<16x128xbf16> to vector<8x32xbf16>
    %114 = vector.extract_strided_slice %38 {offsets = [0, 96], sizes = [8, 32], strides = [1, 1]} : vector<16x128xbf16> to vector<8x32xbf16>
    %cst_47 = arith.constant dense<0.000000e+00> : vector<8x8xf32>
    %115 = tpu.matmul %112, %113, %cst_47 {dimension_numbers = #tpu.dot_dimension_numbers<[1], [1], [0], [0], [0, 0, 1, 0], [], []>} : vector<8x32xbf16>, vector<8x32xbf16>, vector<8x8xf32> -> vector<8x8xf32>
    %116 = vector.broadcast %41 : vector<1x8xf32> to vector<8x8xf32>
    %117 = arith.addf %115, %116 : vector<8x8xf32>
    %cst_48 = arith.constant dense<0xFF800000> : vector<8xf32>
    %118 = vector.multi_reduction <maximumf>, %117, %cst_48 [1] : vector<8x8xf32> to vector<8xf32>
    %119 = vector.shape_cast %118 : vector<8xf32> to vector<8x1xf32>
    %120 = vector.broadcast %119 : vector<8x1xf32> to vector<8x8xf32>
    %121 = arith.subf %117, %120 : vector<8x8xf32>
    %122 = math.exp %121 : vector<8x8xf32>
    %cst_49 = arith.constant dense<0.000000e+00> : vector<8xf32>
    %123 = vector.multi_reduction <add>, %122, %cst_49 [1] : vector<8x8xf32> to vector<8xf32>
    %124 = vector.shape_cast %123 : vector<8xf32> to vector<8x1xf32>
    %125 = tpu.reciprocal %124 {approx = true} : vector<8x1xf32> -> vector<8x1xf32>
    %126 = vector.broadcast %125 : vector<8x1xf32> to vector<8x8xf32>
    %127 = arith.mulf %122, %126 : vector<8x8xf32>
    %128 = arith.truncf %127 : vector<8x8xf32> to vector<8x8xbf16>
    %cst_50 = arith.constant dense<0.000000e+00> : vector<8x32xf32>
    %129 = tpu.matmul %128, %114, %cst_50 {dimension_numbers = #tpu.dot_dimension_numbers<[1], [0], [0], [1], [0, 0, 1, 1], [], []>} : vector<8x8xbf16>, vector<8x32xbf16>, vector<8x32xf32> -> vector<8x32xf32>
    %130 = arith.truncf %129 : vector<8x32xf32> to vector<8x32xbf16>
    %c0_51 = arith.constant 0 : index
    %c3 = arith.constant 3 : index
    %c0_52 = arith.constant 0 : index
    %c0_53 = arith.constant 0 : index
    %131 = vector.load %arg4[%c0_51, %c3, %c0_52, %c0_53] : memref<1x4x32x128xbf16, #tpu.memory_space<vmem>>, vector<1x1x32x128xbf16>
    %132 = vector.shape_cast %131 : vector<1x1x32x128xbf16> to vector<32x128xbf16>
    %cst_54 = arith.constant dense<0.000000e+00> : vector<8x128xf32>
    %133 = tpu.matmul %130, %132, %cst_54 {dimension_numbers = #tpu.dot_dimension_numbers<[1], [0], [0], [1], [0, 0, 1, 1], [], []>} : vector<8x32xbf16>, vector<32x128xbf16>, vector<8x128xf32> -> vector<8x128xf32>
    %134 = arith.addf %111, %133 : vector<8x128xf32>
    %135 = vector.broadcast %14 : vector<1x128xf32> to vector<8x128xf32>
    %136 = arith.addf %134, %135 : vector<8x128xf32>
    %137 = arith.addf %136, %39 : vector<8x128xf32>
    %cst_55 = arith.constant dense<0.000000e+00> : vector<8xf32>
    %138 = vector.multi_reduction <add>, %137, %cst_55 [1] : vector<8x128xf32> to vector<8xf32>
    %139 = vector.shape_cast %138 : vector<8xf32> to vector<8x1xf32>
    %cst_56 = arith.constant 1.280000e+02 : f32
    %140 = vector.broadcast %cst_56 : f32 to vector<8x1xf32>
    %141 = arith.divf %139, %140 : vector<8x1xf32>
    %142 = vector.broadcast %141 : vector<8x1xf32> to vector<8x128xf32>
    %143 = arith.subf %137, %142 : vector<8x128xf32>
    %144 = vector.broadcast %141 : vector<8x1xf32> to vector<8x128xf32>
    %145 = arith.subf %137, %144 : vector<8x128xf32>
    %146 = arith.mulf %143, %145 : vector<8x128xf32>
    %cst_57 = arith.constant dense<0.000000e+00> : vector<8xf32>
    %147 = vector.multi_reduction <add>, %146, %cst_57 [1] : vector<8x128xf32> to vector<8xf32>
    %148 = vector.shape_cast %147 : vector<8xf32> to vector<8x1xf32>
    %cst_58 = arith.constant 1.280000e+02 : f32
    %149 = vector.broadcast %cst_58 : f32 to vector<8x1xf32>
    %150 = arith.divf %148, %149 : vector<8x1xf32>
    %151 = vector.broadcast %141 : vector<8x1xf32> to vector<8x128xf32>
    %152 = arith.subf %137, %151 : vector<8x128xf32>
    %cst_59 = arith.constant 9.99999996E-13 : f32
    %153 = vector.broadcast %cst_59 : f32 to vector<8x1xf32>
    %154 = arith.addf %150, %153 : vector<8x1xf32>
    %155 = math.rsqrt %154 : vector<8x1xf32>
    %156 = vector.broadcast %155 : vector<8x1xf32> to vector<8x128xf32>
    %157 = arith.mulf %152, %156 : vector<8x128xf32>
    %158 = vector.broadcast %15 : vector<1x128xf32> to vector<8x128xf32>
    %159 = arith.mulf %157, %158 : vector<8x128xf32>
    %160 = vector.broadcast %16 : vector<1x128xf32> to vector<8x128xf32>
    %161 = arith.addf %159, %160 : vector<8x128xf32>
    %c0_60 = arith.constant 0 : index
    %c0_61 = arith.constant 0 : index
    %162 = vector.load %arg10[%c0_60, %c0_61] : memref<16x128xf32, #tpu.memory_space<vmem>>, vector<8x128xf32>
    tpu.vector_store %arg10[%c0_60, %c0_61], %161 {strides = array<i32>} : memref<16x128xf32, #tpu.memory_space<vmem>>, vector<8x128xf32>,
    %163 = vector.extract_strided_slice %22 {offsets = [8, 0], sizes = [8, 128], strides = [1, 1]} : vector<16x128xf32> to vector<8x128xf32>
    %c1_62 = arith.constant 1 : index
    %c0_63 = arith.constant 0 : index
    %c0_64 = arith.constant 0 : index
    %164 = vector.load %arg2[%c1_62, %c0_63, %c0_64] : memref<2x1x8xf32, #tpu.memory_space<vmem>>, vector<1x1x8xf32>
    %165 = vector.shape_cast %164 : vector<1x1x8xf32> to vector<1x8xf32>
    %cst_65 = arith.constant 0.000000e+00 : f32
    %166 = vector.broadcast %cst_65 : f32 to vector<8x128xf32>
    %167 = vector.extract_strided_slice %30 {offsets = [8, 0], sizes = [8, 32], strides = [1, 1]} : vector<16x128xbf16> to vector<8x32xbf16>
    %168 = vector.extract_strided_slice %34 {offsets = [8, 0], sizes = [8, 32], strides = [1, 1]} : vector<16x128xbf16> to vector<8x32xbf16>
    %169 = vector.extract_strided_slice %38 {offsets = [8, 0], sizes = [8, 32], strides = [1, 1]} : vector<16x128xbf16> to vector<8x32xbf16>
    %cst_66 = arith.constant dense<0.000000e+00> : vector<8x8xf32>
    %170 = tpu.matmul %167, %168, %cst_66 {dimension_numbers = #tpu.dot_dimension_numbers<[1], [1], [0], [0], [0, 0, 1, 0], [], []>} : vector<8x32xbf16>, vector<8x32xbf16>, vector<8x8xf32> -> vector<8x8xf32>
    %171 = vector.broadcast %165 : vector<1x8xf32> to vector<8x8xf32>
    %172 = arith.addf %170, %171 : vector<8x8xf32>
    %cst_67 = arith.constant dense<0xFF800000> : vector<8xf32>
    %173 = vector.multi_reduction <maximumf>, %172, %cst_67 [1] : vector<8x8xf32> to vector<8xf32>
    %174 = vector.shape_cast %173 : vector<8xf32> to vector<8x1xf32>
    %175 = vector.broadcast %174 : vector<8x1xf32> to vector<8x8xf32>
    %176 = arith.subf %172, %175 : vector<8x8xf32>
    %177 = math.exp %176 : vector<8x8xf32>
    %cst_68 = arith.constant dense<0.000000e+00> : vector<8xf32>
    %178 = vector.multi_reduction <add>, %177, %cst_68 [1] : vector<8x8xf32> to vector<8xf32>
    %179 = vector.shape_cast %178 : vector<8xf32> to vector<8x1xf32>
    %180 = tpu.reciprocal %179 {approx = true} : vector<8x1xf32> -> vector<8x1xf32>
    %181 = vector.broadcast %180 : vector<8x1xf32> to vector<8x8xf32>
    %182 = arith.mulf %177, %181 : vector<8x8xf32>
    %183 = arith.truncf %182 : vector<8x8xf32> to vector<8x8xbf16>
    %cst_69 = arith.constant dense<0.000000e+00> : vector<8x32xf32>
    %184 = tpu.matmul %183, %169, %cst_69 {dimension_numbers = #tpu.dot_dimension_numbers<[1], [0], [0], [1], [0, 0, 1, 1], [], []>} : vector<8x8xbf16>, vector<8x32xbf16>, vector<8x32xf32> -> vector<8x32xf32>
    %185 = arith.truncf %184 : vector<8x32xf32> to vector<8x32xbf16>
    %c0_70 = arith.constant 0 : index
    %c0_71 = arith.constant 0 : index
    %c0_72 = arith.constant 0 : index
    %c0_73 = arith.constant 0 : index
    %186 = vector.load %arg4[%c0_70, %c0_71, %c0_72, %c0_73] : memref<1x4x32x128xbf16, #tpu.memory_space<vmem>>, vector<1x1x32x128xbf16>
    %187 = vector.shape_cast %186 : vector<1x1x32x128xbf16> to vector<32x128xbf16>
    %cst_74 = arith.constant dense<0.000000e+00> : vector<8x128xf32>
    %188 = tpu.matmul %185, %187, %cst_74 {dimension_numbers = #tpu.dot_dimension_numbers<[1], [0], [0], [1], [0, 0, 1, 1], [], []>} : vector<8x32xbf16>, vector<32x128xbf16>, vector<8x128xf32> -> vector<8x128xf32>
    %189 = arith.addf %166, %188 : vector<8x128xf32>
    %190 = vector.extract_strided_slice %30 {offsets = [8, 32], sizes = [8, 32], strides = [1, 1]} : vector<16x128xbf16> to vector<8x32xbf16>
    %191 = vector.extract_strided_slice %34 {offsets = [8, 32], sizes = [8, 32], strides = [1, 1]} : vector<16x128xbf16> to vector<8x32xbf16>
    %192 = vector.extract_strided_slice %38 {offsets = [8, 32], sizes = [8, 32], strides = [1, 1]} : vector<16x128xbf16> to vector<8x32xbf16>
    %cst_75 = arith.constant dense<0.000000e+00> : vector<8x8xf32>
    %193 = tpu.matmul %190, %191, %cst_75 {dimension_numbers = #tpu.dot_dimension_numbers<[1], [1], [0], [0], [0, 0, 1, 0], [], []>} : vector<8x32xbf16>, vector<8x32xbf16>, vector<8x8xf32> -> vector<8x8xf32>
    %194 = vector.broadcast %165 : vector<1x8xf32> to vector<8x8xf32>
    %195 = arith.addf %193, %194 : vector<8x8xf32>
    %cst_76 = arith.constant dense<0xFF800000> : vector<8xf32>
    %196 = vector.multi_reduction <maximumf>, %195, %cst_76 [1] : vector<8x8xf32> to vector<8xf32>
    %197 = vector.shape_cast %196 : vector<8xf32> to vector<8x1xf32>
    %198 = vector.broadcast %197 : vector<8x1xf32> to vector<8x8xf32>
    %199 = arith.subf %195, %198 : vector<8x8xf32>
    %200 = math.exp %199 : vector<8x8xf32>
    %cst_77 = arith.constant dense<0.000000e+00> : vector<8xf32>
    %201 = vector.multi_reduction <add>, %200, %cst_77 [1] : vector<8x8xf32> to vector<8xf32>
    %202 = vector.shape_cast %201 : vector<8xf32> to vector<8x1xf32>
    %203 = tpu.reciprocal %202 {approx = true} : vector<8x1xf32> -> vector<8x1xf32>
    %204 = vector.broadcast %203 : vector<8x1xf32> to vector<8x8xf32>
    %205 = arith.mulf %200, %204 : vector<8x8xf32>
    %206 = arith.truncf %205 : vector<8x8xf32> to vector<8x8xbf16>
    %cst_78 = arith.constant dense<0.000000e+00> : vector<8x32xf32>
    %207 = tpu.matmul %206, %192, %cst_78 {dimension_numbers = #tpu.dot_dimension_numbers<[1], [0], [0], [1], [0, 0, 1, 1], [], []>} : vector<8x8xbf16>, vector<8x32xbf16>, vector<8x32xf32> -> vector<8x32xf32>
    %208 = arith.truncf %207 : vector<8x32xf32> to vector<8x32xbf16>
    %c0_79 = arith.constant 0 : index
    %c1_80 = arith.constant 1 : index
    %c0_81 = arith.constant 0 : index
    %c0_82 = arith.constant 0 : index
    %209 = vector.load %arg4[%c0_79, %c1_80, %c0_81, %c0_82] : memref<1x4x32x128xbf16, #tpu.memory_space<vmem>>, vector<1x1x32x128xbf16>
    %210 = vector.shape_cast %209 : vector<1x1x32x128xbf16> to vector<32x128xbf16>
    %cst_83 = arith.constant dense<0.000000e+00> : vector<8x128xf32>
    %211 = tpu.matmul %208, %210, %cst_83 {dimension_numbers = #tpu.dot_dimension_numbers<[1], [0], [0], [1], [0, 0, 1, 1], [], []>} : vector<8x32xbf16>, vector<32x128xbf16>, vector<8x128xf32> -> vector<8x128xf32>
    %212 = arith.addf %189, %211 : vector<8x128xf32>
    %213 = vector.extract_strided_slice %30 {offsets = [8, 64], sizes = [8, 32], strides = [1, 1]} : vector<16x128xbf16> to vector<8x32xbf16>
    %214 = vector.extract_strided_slice %34 {offsets = [8, 64], sizes = [8, 32], strides = [1, 1]} : vector<16x128xbf16> to vector<8x32xbf16>
    %215 = vector.extract_strided_slice %38 {offsets = [8, 64], sizes = [8, 32], strides = [1, 1]} : vector<16x128xbf16> to vector<8x32xbf16>
    %cst_84 = arith.constant dense<0.000000e+00> : vector<8x8xf32>
    %216 = tpu.matmul %213, %214, %cst_84 {dimension_numbers = #tpu.dot_dimension_numbers<[1], [1], [0], [0], [0, 0, 1, 0], [], []>} : vector<8x32xbf16>, vector<8x32xbf16>, vector<8x8xf32> -> vector<8x8xf32>
    %217 = vector.broadcast %165 : vector<1x8xf32> to vector<8x8xf32>
    %218 = arith.addf %216, %217 : vector<8x8xf32>
    %cst_85 = arith.constant dense<0xFF800000> : vector<8xf32>
    %219 = vector.multi_reduction <maximumf>, %218, %cst_85 [1] : vector<8x8xf32> to vector<8xf32>
    %220 = vector.shape_cast %219 : vector<8xf32> to vector<8x1xf32>
    %221 = vector.broadcast %220 : vector<8x1xf32> to vector<8x8xf32>
    %222 = arith.subf %218, %221 : vector<8x8xf32>
    %223 = math.exp %222 : vector<8x8xf32>
    %cst_86 = arith.constant dense<0.000000e+00> : vector<8xf32>
    %224 = vector.multi_reduction <add>, %223, %cst_86 [1] : vector<8x8xf32> to vector<8xf32>
    %225 = vector.shape_cast %224 : vector<8xf32> to vector<8x1xf32>
    %226 = tpu.reciprocal %225 {approx = true} : vector<8x1xf32> -> vector<8x1xf32>
    %227 = vector.broadcast %226 : vector<8x1xf32> to vector<8x8xf32>
    %228 = arith.mulf %223, %227 : vector<8x8xf32>
    %229 = arith.truncf %228 : vector<8x8xf32> to vector<8x8xbf16>
    %cst_87 = arith.constant dense<0.000000e+00> : vector<8x32xf32>
    %230 = tpu.matmul %229, %215, %cst_87 {dimension_numbers = #tpu.dot_dimension_numbers<[1], [0], [0], [1], [0, 0, 1, 1], [], []>} : vector<8x8xbf16>, vector<8x32xbf16>, vector<8x32xf32> -> vector<8x32xf32>
    %231 = arith.truncf %230 : vector<8x32xf32> to vector<8x32xbf16>
    %c0_88 = arith.constant 0 : index
    %c2_89 = arith.constant 2 : index
    %c0_90 = arith.constant 0 : index
    %c0_91 = arith.constant 0 : index
    %232 = vector.load %arg4[%c0_88, %c2_89, %c0_90, %c0_91] : memref<1x4x32x128xbf16, #tpu.memory_space<vmem>>, vector<1x1x32x128xbf16>
    %233 = vector.shape_cast %232 : vector<1x1x32x128xbf16> to vector<32x128xbf16>
    %cst_92 = arith.constant dense<0.000000e+00> : vector<8x128xf32>
    %234 = tpu.matmul %231, %233, %cst_92 {dimension_numbers = #tpu.dot_dimension_numbers<[1], [0], [0], [1], [0, 0, 1, 1], [], []>} : vector<8x32xbf16>, vector<32x128xbf16>, vector<8x128xf32> -> vector<8x128xf32>
    %235 = arith.addf %212, %234 : vector<8x128xf32>
    %236 = vector.extract_strided_slice %30 {offsets = [8, 96], sizes = [8, 32], strides = [1, 1]} : vector<16x128xbf16> to vector<8x32xbf16>
    %237 = vector.extract_strided_slice %34 {offsets = [8, 96], sizes = [8, 32], strides = [1, 1]} : vector<16x128xbf16> to vector<8x32xbf16>
    %238 = vector.extract_strided_slice %38 {offsets = [8, 96], sizes = [8, 32], strides = [1, 1]} : vector<16x128xbf16> to vector<8x32xbf16>
    %cst_93 = arith.constant dense<0.000000e+00> : vector<8x8xf32>
    %239 = tpu.matmul %236, %237, %cst_93 {dimension_numbers = #tpu.dot_dimension_numbers<[1], [1], [0], [0], [0, 0, 1, 0], [], []>} : vector<8x32xbf16>, vector<8x32xbf16>, vector<8x8xf32> -> vector<8x8xf32>
    %240 = vector.broadcast %165 : vector<1x8xf32> to vector<8x8xf32>
    %241 = arith.addf %239, %240 : vector<8x8xf32>
    %cst_94 = arith.constant dense<0xFF800000> : vector<8xf32>
    %242 = vector.multi_reduction <maximumf>, %241, %cst_94 [1] : vector<8x8xf32> to vector<8xf32>
    %243 = vector.shape_cast %242 : vector<8xf32> to vector<8x1xf32>
    %244 = vector.broadcast %243 : vector<8x1xf32> to vector<8x8xf32>
    %245 = arith.subf %241, %244 : vector<8x8xf32>
    %246 = math.exp %245 : vector<8x8xf32>
    %cst_95 = arith.constant dense<0.000000e+00> : vector<8xf32>
    %247 = vector.multi_reduction <add>, %246, %cst_95 [1] : vector<8x8xf32> to vector<8xf32>
    %248 = vector.shape_cast %247 : vector<8xf32> to vector<8x1xf32>
    %249 = tpu.reciprocal %248 {approx = true} : vector<8x1xf32> -> vector<8x1xf32>
    %250 = vector.broadcast %249 : vector<8x1xf32> to vector<8x8xf32>
    %251 = arith.mulf %246, %250 : vector<8x8xf32>
    %252 = arith.truncf %251 : vector<8x8xf32> to vector<8x8xbf16>
    %cst_96 = arith.constant dense<0.000000e+00> : vector<8x32xf32>
    %253 = tpu.matmul %252, %238, %cst_96 {dimension_numbers = #tpu.dot_dimension_numbers<[1], [0], [0], [1], [0, 0, 1, 1], [], []>} : vector<8x8xbf16>, vector<8x32xbf16>, vector<8x32xf32> -> vector<8x32xf32>
    %254 = arith.truncf %253 : vector<8x32xf32> to vector<8x32xbf16>
    %c0_97 = arith.constant 0 : index
    %c3_98 = arith.constant 3 : index
    %c0_99 = arith.constant 0 : index
    %c0_100 = arith.constant 0 : index
    %255 = vector.load %arg4[%c0_97, %c3_98, %c0_99, %c0_100] : memref<1x4x32x128xbf16, #tpu.memory_space<vmem>>, vector<1x1x32x128xbf16>
    %256 = vector.shape_cast %255 : vector<1x1x32x128xbf16> to vector<32x128xbf16>
    %cst_101 = arith.constant dense<0.000000e+00> : vector<8x128xf32>
    %257 = tpu.matmul %254, %256, %cst_101 {dimension_numbers = #tpu.dot_dimension_numbers<[1], [0], [0], [1], [0, 0, 1, 1], [], []>} : vector<8x32xbf16>, vector<32x128xbf16>, vector<8x128xf32> -> vector<8x128xf32>
    %258 = arith.addf %235, %257 : vector<8x128xf32>
    %259 = vector.broadcast %14 : vector<1x128xf32> to vector<8x128xf32>
    %260 = arith.addf %258, %259 : vector<8x128xf32>
    %261 = arith.addf %260, %163 : vector<8x128xf32>
    %cst_102 = arith.constant dense<0.000000e+00> : vector<8xf32>
    %262 = vector.multi_reduction <add>, %261, %cst_102 [1] : vector<8x128xf32> to vector<8xf32>
    %263 = vector.shape_cast %262 : vector<8xf32> to vector<8x1xf32>
    %cst_103 = arith.constant 1.280000e+02 : f32
    %264 = vector.broadcast %cst_103 : f32 to vector<8x1xf32>
    %265 = arith.divf %263, %264 : vector<8x1xf32>
    %266 = vector.broadcast %265 : vector<8x1xf32> to vector<8x128xf32>
    %267 = arith.subf %261, %266 : vector<8x128xf32>
    %268 = vector.broadcast %265 : vector<8x1xf32> to vector<8x128xf32>
    %269 = arith.subf %261, %268 : vector<8x128xf32>
    %270 = arith.mulf %267, %269 : vector<8x128xf32>
    %cst_104 = arith.constant dense<0.000000e+00> : vector<8xf32>
    %271 = vector.multi_reduction <add>, %270, %cst_104 [1] : vector<8x128xf32> to vector<8xf32>
    %272 = vector.shape_cast %271 : vector<8xf32> to vector<8x1xf32>
    %cst_105 = arith.constant 1.280000e+02 : f32
    %273 = vector.broadcast %cst_105 : f32 to vector<8x1xf32>
    %274 = arith.divf %272, %273 : vector<8x1xf32>
    %275 = vector.broadcast %265 : vector<8x1xf32> to vector<8x128xf32>
    %276 = arith.subf %261, %275 : vector<8x128xf32>
    %cst_106 = arith.constant 9.99999996E-13 : f32
    %277 = vector.broadcast %cst_106 : f32 to vector<8x1xf32>
    %278 = arith.addf %274, %277 : vector<8x1xf32>
    %279 = math.rsqrt %278 : vector<8x1xf32>
    %280 = vector.broadcast %279 : vector<8x1xf32> to vector<8x128xf32>
    %281 = arith.mulf %276, %280 : vector<8x128xf32>
    %282 = vector.broadcast %15 : vector<1x128xf32> to vector<8x128xf32>
    %283 = arith.mulf %281, %282 : vector<8x128xf32>
    %284 = vector.broadcast %16 : vector<1x128xf32> to vector<8x128xf32>
    %285 = arith.addf %283, %284 : vector<8x128xf32>
    %c8 = arith.constant 8 : index
    %c0_107 = arith.constant 0 : index
    %286 = vector.load %arg10[%c8, %c0_107] : memref<16x128xf32, #tpu.memory_space<vmem>>, vector<8x128xf32>
    tpu.vector_store %arg10[%c8, %c0_107], %285 {strides = array<i32>} : memref<16x128xf32, #tpu.memory_space<vmem>>, vector<8x128xf32>,
    %c0_108 = arith.constant 0 : index
    %c0_109 = arith.constant 0 : index
    %287 = vector.load %arg10[%c0_108, %c0_109] : memref<16x128xf32, #tpu.memory_space<vmem>>, vector<16x128xf32>
    %288 = arith.truncf %287 : vector<16x128xf32> to vector<16x128xbf16>
    %cst_110 = arith.constant dense<0.000000e+00> : vector<16x512xf32>
    %289 = tpu.matmul %288, %6, %cst_110 {dimension_numbers = #tpu.dot_dimension_numbers<[1], [0], [0], [1], [0, 0, 1, 1], [], []>} : vector<16x128xbf16>, vector<128x512xbf16>, vector<16x512xf32> -> vector<16x512xf32>
    %290 = vector.broadcast %21 : vector<1x512xf32> to vector<16x512xf32>
    %291 = arith.addf %289, %290 : vector<16x512xf32>
    %cst_111 = arith.constant 5.000000e-01 : f32
    %292 = vector.broadcast %cst_111 : f32 to vector<16x512xf32>
    %293 = arith.mulf %292, %291 : vector<16x512xf32>
    %cst_112 = arith.constant 4.471500e-02 : f32
    %294 = vector.broadcast %cst_112 : f32 to vector<16x512xf32>
    %295 = arith.mulf %294, %291 : vector<16x512xf32>
    %296 = arith.mulf %295, %291 : vector<16x512xf32>
    %297 = arith.mulf %296, %291 : vector<16x512xf32>
    %298 = arith.addf %291, %297 : vector<16x512xf32>
    %cst_113 = arith.constant 0.797884583 : f32
    %299 = vector.broadcast %cst_113 : f32 to vector<16x512xf32>
    %300 = arith.mulf %299, %298 : vector<16x512xf32>
    %301 = math.tanh %300 : vector<16x512xf32>
    %cst_114 = arith.constant 1.000000e+00 : f32
    %302 = vector.broadcast %cst_114 : f32 to vector<16x512xf32>
    %303 = arith.addf %302, %301 : vector<16x512xf32>
    %304 = arith.mulf %293, %303 : vector<16x512xf32>
    %305 = arith.truncf %304 : vector<16x512xf32> to vector<16x512xbf16>
    %cst_115 = arith.constant dense<0.000000e+00> : vector<16x128xf32>
    %306 = tpu.matmul %305, %8, %cst_115 {dimension_numbers = #tpu.dot_dimension_numbers<[1], [0], [0], [1], [0, 0, 1, 1], [], []>} : vector<16x512xbf16>, vector<512x128xbf16>, vector<16x128xf32> -> vector<16x128xf32>
    %307 = vector.broadcast %17 : vector<1x128xf32> to vector<16x128xf32>
    %308 = arith.addf %306, %307 : vector<16x128xf32>
    %309 = arith.addf %308, %287 : vector<16x128xf32>
    %cst_116 = arith.constant dense<0.000000e+00> : vector<16xf32>
    %310 = vector.multi_reduction <add>, %309, %cst_116 [1] : vector<16x128xf32> to vector<16xf32>
    %311 = vector.shape_cast %310 : vector<16xf32> to vector<16x1xf32>
    %cst_117 = arith.constant 1.280000e+02 : f32
    %312 = vector.broadcast %cst_117 : f32 to vector<16x1xf32>
    %313 = arith.divf %311, %312 : vector<16x1xf32>
    %314 = vector.broadcast %313 : vector<16x1xf32> to vector<16x128xf32>
    %315 = arith.subf %309, %314 : vector<16x128xf32>
    %316 = vector.broadcast %313 : vector<16x1xf32> to vector<16x128xf32>
    %317 = arith.subf %309, %316 : vector<16x128xf32>
    %318 = arith.mulf %315, %317 : vector<16x128xf32>
    %cst_118 = arith.constant dense<0.000000e+00> : vector<16xf32>
    %319 = vector.multi_reduction <add>, %318, %cst_118 [1] : vector<16x128xf32> to vector<16xf32>
    %320 = vector.shape_cast %319 : vector<16xf32> to vector<16x1xf32>
    %cst_119 = arith.constant 1.280000e+02 : f32
    %321 = vector.broadcast %cst_119 : f32 to vector<16x1xf32>
    %322 = arith.divf %320, %321 : vector<16x1xf32>
    %323 = vector.broadcast %313 : vector<16x1xf32> to vector<16x128xf32>
    %324 = arith.subf %309, %323 : vector<16x128xf32>
    %cst_120 = arith.constant 9.99999996E-13 : f32
    %325 = vector.broadcast %cst_120 : f32 to vector<16x1xf32>
    %326 = arith.addf %322, %325 : vector<16x1xf32>
    %327 = math.rsqrt %326 : vector<16x1xf32>
    %328 = vector.broadcast %327 : vector<16x1xf32> to vector<16x128xf32>
    %329 = arith.mulf %324, %328 : vector<16x128xf32>
    %330 = vector.broadcast %18 : vector<1x128xf32> to vector<16x128xf32>
    %331 = arith.mulf %329, %330 : vector<16x128xf32>
    %332 = vector.broadcast %19 : vector<1x128xf32> to vector<16x128xf32>
    %333 = arith.addf %331, %332 : vector<16x128xf32>
    %c0_121 = arith.constant 0 : index
    %c0_122 = arith.constant 0 : index
    %334 = vector.load %arg9[%c0_121, %c0_122] : memref<16x128xf32, #tpu.memory_space<vmem>>, vector<16x128xf32>
    tpu.vector_store %arg9[%c0_121, %c0_122], %333 {strides = array<i32>} : memref<16x128xf32, #tpu.memory_space<vmem>>, vector<16x128xf32>,
    return
  }
  func.func @transform_0(%arg0: i32) -> (i32, i32) {
    %c0_i32 = arith.constant 0 : i32
    %c0_i32_0 = arith.constant 0 : i32
    %c0_i32_1 = arith.constant 0 : i32
    return %c0_i32, %c0_i32_0 : i32, i32
  }
  func.func @transform_1(%arg0: i32) -> (i32, i32, i32) {
    %c0_i32 = arith.constant 0 : i32
    %c0_i32_0 = arith.constant 0 : i32
    %c0_i32_1 = arith.constant 0 : i32
    %c0_i32_2 = arith.constant 0 : i32
    return %c0_i32, %c0_i32_0, %c0_i32_1 : i32, i32, i32
  }
  func.func @transform_2(%arg0: i32) -> (i32, i32, i32) {
    %c0_i32 = arith.constant 0 : i32
    %c0_i32_0 = arith.constant 0 : i32
    %c0_i32_1 = arith.constant 0 : i32
    return %arg0, %c0_i32, %c0_i32_0 : i32, i32, i32
  }
  func.func @transform_3(%arg0: i32) -> (i32, i32, i32, i32) {
    %c0_i32 = arith.constant 0 : i32
    %c0_i32_0 = arith.constant 0 : i32
    %c0_i32_1 = arith.constant 0 : i32
    %c0_i32_2 = arith.constant 0 : i32
    return %arg0, %c0_i32, %c0_i32_0, %c0_i32_1 : i32, i32, i32, i32
  }
  func.func @transform_4(%arg0: i32) -> (i32, i32, i32) {
    %c0_i32 = arith.constant 0 : i32
    %c0_i32_0 = arith.constant 0 : i32
    %c0_i32_1 = arith.constant 0 : i32
    return %arg0, %c0_i32, %c0_i32_0 : i32, i32, i32
  }
  func.func @transform_5(%arg0: i32) -> (i32, i32, i32) {
    %c0_i32 = arith.constant 0 : i32
    %c0_i32_0 = arith.constant 0 : i32
    %c0_i32_1 = arith.constant 0 : i32
    return %arg0, %c0_i32, %c0_i32_0 : i32, i32, i32
  }
  func.func @transform_6(%arg0: i32) -> (i32, i32, i32) {
    %c0_i32 = arith.constant 0 : i32
    %c0_i32_0 = arith.constant 0 : i32
    %c0_i32_1 = arith.constant 0 : i32
    return %arg0, %c0_i32, %c0_i32_0 : i32, i32, i32
  }
  func.func @transform_7(%arg0: i32) -> (i32, i32, i32) {
    %c0_i32 = arith.constant 0 : i32
    %c0_i32_0 = arith.constant 0 : i32
    %c0_i32_1 = arith.constant 0 : i32
    return %arg0, %c0_i32, %c0_i32_0 : i32, i32, i32
  }
  func.func @transform_8(%arg0: i32) -> (i32, i32) {
    %c0_i32 = arith.constant 0 : i32
    %c0_i32_0 = arith.constant 0 : i32
    %c0_i32_1 = arith.constant 0 : i32
    return %c0_i32, %c0_i32_0 : i32, i32
  }
}

</mosaic_0001>

<bundles_post_ra>
// kernel: tpu_custom_call.1
= control target key start
LH: loop header
LB: loop body
LE: loop exit
PB: predicated region body
PF: predicated region fallthrough
CT: control target
= control target key end

     0   :  { %s3922_s0 = inlined_call_operand.vmem [shape: f32[16,128], index: 0, kind: input, shape index: {}]   ;;  %s3923_s1 = inlined_call_operand.vmem [shape: f32[2,1,8], index: 1, kind: input, shape index: {}]   ;;  %s3924_s2 = inlined_call_operand.hbm [shape: bf16[2,128,384], index: 2, kind: input, shape index: {}]   ;;  %s3925_s3 = inlined_call_operand.hbm [shape: bf16[2,4,32,128], index: 3, kind: input, shape index: {}]   ;;  %s3926_s4 = inlined_call_operand.hbm [shape: bf16[2,128,512], index: 4, kind: input, shape index: {}]   ;;  %s3927_s5 = inlined_call_operand.hbm [shape: bf16[2,512,128], index: 5, kind: input, shape index: {}]   ;;  %s3928_s6 = inlined_call_operand.vmem [shape: f32[2,9,128], index: 6, kind: input, shape index: {}]   ;;  %s3929_s7 = inlined_call_operand.vmem [shape: f32[2,1,512], index: 7, kind: input, shape index: {}]   ;;  %s3930_s8 = inlined_call_operand.hbm [shape: f32[16,128], index: 8, kind: output, shape index: {}]  }
   0x1   :  { %3936 = sst [smem:[#allocation19_spill]] %s3925_s3 }
   0x2   :  { %13 = vsyncpa [#allocation4], 0 }
   0x3   :  { %15 = vsyncpa [#allocation4 + $0x1], 0 }
   0x4   :  { %16 = vsyncpa [#allocation7], 0 }
   0x5   :  { %18 = vsyncpa [#allocation7 + $0x1], 0 }
   0x6   :  { %19 = vsyncpa [#allocation10], 0 }
   0x7   :  { %21 = vsyncpa [#allocation10 + $0x1], 0 }
   0x8   :  { %22 = vsyncpa [#allocation5], 0  ;;  %s3345_s27 = smov 0   ;;  %s3347_s28 = smov 0  }
   0x9   :  { %s3349_s29 = smov 0   ;;  %s3351_s30 = smov 0  }
   0xa LB: > { %3937 = sst [smem:[#allocation16_spill]] %s3281_s29  ;;  %s3364_s9 = sadd.s32 4294967295, %s3285_s30   ;;  %s3285_s30 = sphi %s3351_s30, %s3946_s30   ;;  %s3281_s29 = sphi %s3349_s29, %s3948_s29   ;;  %s3277_s28 = sphi %s3347_s28, %s3950_s28   ;;  %s3273_s27 = sphi %s3345_s27, %s3949_s27  }
   0xb   : > { %s3367_s10 = sadd.s32 1, %s3285_s30   ;;  %s77_s12 = sadd.s32 1, %s3281_s29 }
   0xc   : > { %3938 = sst [smem:[#allocation17_spill]] %s3367_s10  ;;  %s74_s11 = ssub.s32 %s3285_s30, %s3367_s10 }
   0xd   : > { %p75_p0 = scmp.eq.s32.totalorder %s74_s11, 0  ;;  %p84_p1 = scmp.ne.s32.totalorder %s3281_s29, %s3277_s28 }
   0xe   : > { %p85_p2 = scmp.eq.s32.totalorder %s3285_s30, 0  ;;  %p90_p3 = scmp.ne.s32.totalorder %s3277_s28, %s3273_s27 }
   0xf   : > { %s3377_s13 = scalar_select %p75_p0, %s3281_s29, %s77_s12  }
  0x10   : > { %p86_p4 = por %p85_p2, %p84_p1  ;;  %p91_p5 = scmp.eq.s32.totalorder %s3364_s9, 0 }
  0x11   : > { %3939 = sst [smem:[#allocation18_spill]] %s3377_s13  ;;  %p2981_p6 = scmp.lt.s32.totalorder %s3285_s30, 2 }
  0x12   : > { %p3381_p7 = por %p91_p5, %p90_p3  ;;  %s3386_s15 = sand.u32 1, %s3281_s29  }
  0x13   : > { %p3388_p8 = pnand %p2981_p6, %p86_p4  ;;  %s293_s17 = sand.u32 1, %s3285_s30  }
  0x14   : > { %s2359_s18 = sshll.u32 %s3386_s15, 6  ;;  %s2845_s19 = sshll.u32 %s3285_s30, 6 }
  0x15   : > { %s297_s20 = scalar_lea.vmem [#allocation6], %s2359_s18  ;;  %s3942_s3 = sld [smem:[#allocation19_spill]] }
  0x16   : > { %s305_s21 = sshll.u32 %s297_s20, 4  ;;  %s3398_s26 = scalar_lea.sflag [#allocation7], %s293_s17  ;;  %s306_s21 = int_to_ptr.vmem [resolvable:$true] %s305_s21 }
  0x17   : > { %p3095_p10 = pneg %p3388_p8 }
  0x1b   : > { %s302_s24 = scalar_lea.hbm %s3942_s3, %s2845_s19  ;;  %s3098_s20 = scalar_lea.hbm %s3942_s3, 128 }
  0x1c   : > { %s303_s25 = sshll.u32 %s302_s24, 4  ;;  %s304_s25 = int_to_ptr.hbm [resolvable:$true] %s303_s25 }
  0x1d   : > { %s3091_s27 = sshra.s32 %s304_s25, 4  ;;  %s3092_s27 = int_to_ptr.hbm [resolvable:$true] %s3091_s27 }
  0x1e   : > { %s3093_s11 = scalar_lea.hbm %s3092_s27, 64  ;;  %p3099_p13 = scmp.lt.s32.totalorder %s3092_s27, %s3942_s3 }
  0x1f   : > { %p3094_p9 = scmp.ne.s32.totalorder %s3092_s27, %s3093_s11  ;;  %p3100_p0 = scmp.lt.s32.totalorder %s3098_s20, %s3093_s11 }
  0x21   : > { %p3096_p11 = pnand %p3095_p10, %p3094_p9  ;;  %p3101_p1 = por %p3100_p0, %p3099_p13 }
  0x23   : > { %p3097_p12 = pneg %p3096_p11 }
  0x25   : > { %p3102_p2 = pnand %p3101_p1, %p3097_p12 }
  0x27   : > { %3105 = shalt.err (!%p3102_p2)
}
  0x28   : > { %s3931_s17 = smov 64   ;;  %s3932_s23 = smov 4  }
  0x29   : > { %2974 = dma.hbm_to_vmem [thread:$0]  (!%p3388_p8), %s304_s25, 1024, %s306_s21, %s3398_s26, %s3931_s17, %s3931_s17, %s3932_s23  }
  0x2a   : > { %p2368_p3 = scmp.ge.s32.totalorder %s3285_s30, 1  ;;  %p372_p4 = scmp.lt.s32.totalorder %s3285_s30, 3 }
  0x2b   : > { %s2953_s24 = smul.u32 192, %s3386_s15  ;;  %s272_s13 = scalar_lea.sflag [#allocation4], %s3386_s15 }
  0x2c   : > { %p3420_p5 = pnand %p2368_p3, %p372_p4  ;;  %s2954_s11 = smul.u32 192, %s3285_s30 }
  0x2d   : > { %s275_s19 = scalar_lea.vmem [#allocation3], %s2953_s24  ;;  %s3128_s29 = scalar_lea.hbm %s3924_s2, 384 }
  0x2e   : > { %s280_s20 = scalar_lea.hbm %s3924_s2, %s2954_s11  ;;  %s283_s22 = sshll.u32 %s275_s19, 4  ;;  %s284_s22 = int_to_ptr.vmem [resolvable:$true] %s283_s22 }
  0x2f   : > { %s281_s3 = sshll.u32 %s280_s20, 4  ;;  %s282_s3 = int_to_ptr.hbm [resolvable:$true] %s281_s3 }
  0x30   : > { %s3121_s21 = sshra.s32 %s282_s3, 4  ;;  %s3122_s21 = int_to_ptr.hbm [resolvable:$true] %s3121_s21 }
  0x31   : > { %s3123_s25 = scalar_lea.hbm %s3122_s21, 192  ;;  %p3129_p12 = scmp.lt.s32.totalorder %s3122_s21, %s3924_s2 }
  0x32   : > { %p3124_p6 = scmp.ne.s32.totalorder %s3122_s21, %s3123_s25  ;;  %p3130_p13 = scmp.lt.s32.totalorder %s3128_s29, %s3123_s25 }
  0x34   : > { %p3126_p9 = pnand %p3124_p6, %p3095_p10  ;;  %p3131_p0 = por %p3130_p13, %p3129_p12 }
  0x36   : > { %p3127_p11 = pneg %p3126_p9 }
  0x38   : > { %p3132_p1 = pnand %p3131_p0, %p3127_p11 }
  0x3a   : > { %3135 = shalt.err (!%p3132_p1)
}
  0x3b   : > { %s3289_s24 = smov 192   ;;  %s3290_s18 = smov 12  }
  0x3c   : > { %2971 = dma.hbm_to_vmem [thread:$0]  (!%p3388_p8), %s282_s3, 3072, %s284_s22, %s272_s13, %s3289_s24, %s3289_s24, %s3290_s18  }
  0x3d   : > { %s2362_s20 = sshll.u32 %s3386_s15, 8  ;;  %s2846_s19 = sshll.u32 %s3285_s30, 8 }
  0x3e   : > { %s324_s10 = scalar_lea.hbm %s3926_s4, %s2846_s19  ;;  %s319_s21 = scalar_lea.vmem [#allocation8], %s2362_s20 }
  0x3f   : > { %s325_s12 = sshll.u32 %s324_s10, 4  ;;  %s327_s29 = sshll.u32 %s319_s21, 4  ;;  %s326_s12 = int_to_ptr.hbm [resolvable:$true] %s325_s12  ;;  %s328_s29 = int_to_ptr.vmem [resolvable:$true] %s327_s29 }
  0x40   : > { %s3151_s25 = sshra.s32 %s326_s12, 4  ;;  %s3158_s30 = scalar_lea.hbm %s3926_s4, 512  ;;  %s3152_s25 = int_to_ptr.hbm [resolvable:$true] %s3151_s25 }
  0x41   : > { %s3153_s11 = scalar_lea.hbm %s3152_s25, 256  ;;  %p3159_p6 = scmp.lt.s32.totalorder %s3152_s25, %s3926_s4 }
  0x42   : > { %p3154_p2 = scmp.ne.s32.totalorder %s3152_s25, %s3153_s11  ;;  %p3160_p9 = scmp.lt.s32.totalorder %s3158_s30, %s3153_s11 }
  0x44   : > { %p3156_p3 = pnand %p3154_p2, %p3095_p10  ;;  %p3161_p11 = por %p3160_p9, %p3159_p6 }
  0x46   : > { %p3157_p4 = pneg %p3156_p3 }
  0x48   : > { %p3162_p12 = pnand %p3161_p11, %p3157_p4 }
  0x4a   : > { %3165 = shalt.err (!%p3162_p12)
}
  0x4b   : > { %s3291_s10 = smov 256   ;;  %s3292_s18 = smov 16  }
  0x4c   : > { %2977 = dma.hbm_to_vmem [thread:$0]  (!%p3388_p8), %s326_s12, 4096, %s328_s29, %s3398_s26, %s3291_s10, %s3291_s10, %s3292_s18  }
  0x4d   : > { %s346_s21 = scalar_lea.hbm %s3927_s5, %s2846_s19  ;;  %s341_s3 = scalar_lea.vmem [#allocation9], %s2362_s20 }
  0x4e   : > { %s349_s13 = sshll.u32 %s341_s3, 4  ;;  %s347_s22 = sshll.u32 %s346_s21, 4  ;;  %s350_s13 = int_to_ptr.vmem [resolvable:$true] %s349_s13  ;;  %s348_s22 = int_to_ptr.hbm [resolvable:$true] %s347_s22 }
  0x4f   : > { %s338_s25 = scalar_lea.sflag [#allocation10], %s3386_s15  ;;  %s3181_s11 = sshra.s32 %s348_s22, 4  ;;  %s3182_s11 = int_to_ptr.hbm [resolvable:$true] %s3181_s11 }
  0x50   : > { %s3183_s30 = scalar_lea.hbm %s3182_s11, 256  ;;  %s3188_s12 = scalar_lea.hbm %s3927_s5, 512 }
  0x51   : > { %p3184_p13 = scmp.ne.s32.totalorder %s3182_s11, %s3183_s30  ;;  %p3189_p2 = scmp.lt.s32.totalorder %s3182_s11, %s3927_s5 }
  0x52   : > { %p3190_p3 = scmp.lt.s32.totalorder %s3188_s12, %s3183_s30 }
  0x53   : > { %p3186_p0 = pnand %p3184_p13, %p3095_p10 }
  0x54   : > { %p3191_p4 = por %p3190_p3, %p3189_p2 }
  0x55   : > { %p3187_p1 = pneg %p3186_p0 }
  0x57   : > { %p3192_p6 = pnand %p3191_p4, %p3187_p1 }
  0x59   : > { %3195 = shalt.err (!%p3192_p6)
}
  0x5a   : > { %s3944_s15 = smov 4   ;;  %s3945_s20 = smov 64  }
  0x5b   : > { %2980 = dma.hbm_to_vmem [thread:$0]  (!%p3388_p8), %s348_s22, 4096, %s350_s13, %s338_s25, %s3945_s20, %s3945_s20, %s3944_s15  }
  0x5c   : > { %376 = sbr.rel (%p3420_p5) target bundleno = 3297 (0xce1), region = 52  ;;  %s378_s10 = sand.u32 (!%p3420_p5), 1, %s3277_s28  }
  0x5d   : > { %s2955_s18 = smul.u32 (!%p3420_p5), 192, %s378_s10  ;;  %s379_s17 = scalar_lea.sflag (!%p3420_p5), [#allocation4], %s378_s10 }
  0x5f   : > { %s3478_s23 = scalar_lea.vmem (!%p3420_p5), [#allocation3], %s2955_s18 }
  0x61   : > { %3256 = dma.done.wait (%p3381_p7), %s379_s17, 3072  }
  0x62   : > { %3258 = vsyncadd (%p3381_p7), %s379_s17, 4294964224  ;;  %s388_s16 = sand.u32 1, %s3364_s9   ;;  %s2369_s21 = sshll.u32 %s378_s10, 6 }
  0x63   : > { %s389_s3 = scalar_lea.sflag [#allocation7], %s388_s16  ;;  %s3485_s13 = scalar_lea.vmem [#allocation6], %s2369_s21 }
  0x64   : > { %3260 = dma.done.wait (%p3381_p7), %s389_s3, 5120  }
  0x65   : > { %3262 = vsyncadd (%p3381_p7), %s389_s3, 4294962176  ;;  %s2370_s27 = sshll.u32 %s378_s10, 8  ;;  %s409_s25 = scalar_lea.sflag [#allocation10], %s378_s10 }
  0x66   : > { %s3491_s22 = scalar_lea.vmem [#allocation8], %s2370_s27  ;;  %s3493_s11 = scalar_lea.vmem [#allocation9], %s2370_s27 }
  0x67   : > { %3264 = dma.done.wait (%p3381_p7), %s409_s25, 4096  }
  0x68   : > { %3266 = vsyncadd (%p3381_p7), %s409_s25, 4294963200  ;;  %p465_p8 = scmp.lt.s32.totalorder %s3364_s9, 1  ;;  %p2375_p10 = scmp.ne.s32.totalorder %s3364_s9, 0 }
  0x6a   : > { %s466_s30 = scalar_select %p465_p8, %s3364_s9, 1 }
  0x6b   : > { %478 = sbr.rel (%p2375_p10) target bundleno = 115 (0x73), region = 72 }
  0x6c   : > { %s2848_s24 = sshll.u32 %s466_s30, 4  ;;  %s2374_s26 = sshll.u32 %s466_s30, 2 }
  0x6d   : > { %s3504_s19 = scalar_lea.vmem %s3928_s6, %s2848_s24  ;;  %s3509_s10 = scalar_lea.vmem %s3929_s7, %s2374_s26 }
  0x70   : > { %v479_v0 = vld [vmem:[%s3922_s0] sm:$0xff]  ;;  %v480_v1 = vld [vmem:[%s3922_s0 + $0x8] sm:$0xff] }
  0x71   : > { %481 = vst [vmem:[#allocation11] sm:$0xff] %v479_v0 }
  0x72   : > { %482 = vst [vmem:[#allocation11 + $0x8] sm:$0xff] %v480_v1 }
  0x73 PF: > { %v2462_v2 = vld [vmem:[%s3478_s23 + $0xa8] sm:$0xf]  ;;  %v2871_v3 = vld [vmem:[%s3478_s23 + $0xb0] sm:$0xf0]  ;;  %v2870_v4 = vld [vmem:[%s3478_s23 + $0xac] sm:$0xf] }
  0x74   : > { %v2463_v5 = vor.u32 %v2871_v3, %v2462_v2  ;;  %v2464_v6 = vld [vmem:[%s3478_s23 + $0xb4] sm:$0xf0]  ;;  %v2450_v7 = vld [vmem:[%s3478_s23 + $0x90] sm:$0xf]  ;;  %v2868_v8 = vld [vmem:[%s3478_s23 + $0x98] sm:$0xf0] }
  0x75   : > { %v2467_v9 = vor.u32 %v2870_v4, %v2464_v6  ;;  %v2867_v10 = vld [vmem:[%s3478_s23 + $0x94] sm:$0xf]  ;;  %v2452_v11 = vld [vmem:[%s3478_s23 + $0x9c] sm:$0xf0]  ;;  %v2451_v12 = vor.u32 %v2868_v8, %v2450_v7  ;;  %v2438_v14 = vld [vmem:[%s3478_s23 + $0x78] sm:$0xf] }
  0x76   : > { %745 = vmatpush.bf16.msra.mxu0 %v2463_v5  ;;  %v2455_v13 = vor.u32 %v2867_v10, %v2452_v11  ;;  %v2865_v15 = vld [vmem:[%s3478_s23 + $0x80] sm:$0xf0]  ;;  %v2864_v16 = vld [vmem:[%s3478_s23 + $0x7c] sm:$0xf]  ;;  %v2440_v17 = vld [vmem:[%s3478_s23 + $0x84] sm:$0xf0] }
  0x77   : > { %759 = vmatpush.bf16.msra.mxu1 %v2467_v9  ;;  %v2439_v18 = vor.u32 %v2865_v15, %v2438_v14  ;;  %v2443_v19 = vor.u32 %v2864_v16, %v2440_v17  ;;  %v2426_v20 = vld [vmem:[%s3478_s23 + $0x60] sm:$0xf]  ;;  %v2862_v21 = vld [vmem:[%s3478_s23 + $0x68] sm:$0xf0]  ;;  %v2861_v22 = vld [vmem:[%s3478_s23 + $0x64] sm:$0xf] }
  0x78   : > { %v2428_v23 = vld [vmem:[%s3478_s23 + $0x6c] sm:$0xf0]  ;;  %v2427_v24 = vor.u32 %v2862_v21, %v2426_v20  ;;  %v2414_v25 = vld [vmem:[%s3478_s23 + $0x48] sm:$0xf]  ;;  %v2872_v27 = vld [vmem:[%s3478_s23 + $0xb8] sm:$0xf0] }
  0x79   : > { %v2470_v26 = vld [vmem:[%s3478_s23 + $0xb0] sm:$0xf]  ;;  %v2431_v28 = vor.u32 %v2861_v22, %v2428_v23  ;;  %v2859_v29 = vld [vmem:[%s3478_s23 + $0x50] sm:$0xf0]  ;;  %v2458_v31 = vld [vmem:[%s3478_s23 + $0x98] sm:$0xf] }
  0x7a   : > { %746 = vmatpush.bf16.msra.mxu0 %v2451_v12  ;;  %v2471_v30 = vor.u32 %v2872_v27, %v2470_v26  ;;  %v2869_v32 = vld [vmem:[%s3478_s23 + $0xa0] sm:$0xf0]  ;;  %v2858_v33 = vld [vmem:[%s3478_s23 + $0x4c] sm:$0xf]  ;;  %v2416_v34 = vld [vmem:[%s3478_s23 + $0x54] sm:$0xf0]  ;;  %v2415_v36 = vor.u32 %v2859_v29, %v2414_v25 }
  0x7b   : > { %760 = vmatpush.bf16.msra.mxu1 %v2455_v13  ;;  %v2459_v35 = vor.u32 %v2869_v32, %v2458_v31  ;;  %v2402_v37 = vld [vmem:[%s3478_s23 + $0x30] sm:$0xf]  ;;  %v2446_v38 = vld [vmem:[%s3478_s23 + $0x80] sm:$0xf]  ;;  %v2866_v39 = vld [vmem:[%s3478_s23 + $0x88] sm:$0xf0]  ;;  %v2419_v40 = vor.u32 %v2858_v33, %v2416_v34 }
  0x7c   : > { %773 = vmatpush.bf16.msra.mxu2 %v2471_v30  ;;  %v2856_v41 = vld [vmem:[%s3478_s23 + $0x38] sm:$0xf0]  ;;  %v2855_v42 = vld [vmem:[%s3478_s23 + $0x34] sm:$0xf]  ;;  %v2404_v43 = vld [vmem:[%s3478_s23 + $0x3c] sm:$0xf0]  ;;  %v2447_v44 = vor.u32 %v2866_v39, %v2446_v38 }
  0x7d   : > { %v2403_v45 = vor.u32 %v2856_v41, %v2402_v37  ;;  %v2434_v46 = vld [vmem:[%s3478_s23 + $0x68] sm:$0xf]  ;;  %v2863_v47 = vld [vmem:[%s3478_s23 + $0x70] sm:$0xf0]  ;;  %v2407_v48 = vor.u32 %v2855_v42, %v2404_v43  ;;  %v2390_v49 = vld [vmem:[%s3478_s23 + $0x18] sm:$0xf] }
  0x7e   : > { %747 = vmatpush.bf16.msra.mxu0 %v2439_v18  ;;  %v2853_v50 = vld [vmem:[%s3478_s23 + $0x20] sm:$0xf0]  ;;  %v2852_v51 = vld [vmem:[%s3478_s23 + $0x1c] sm:$0xf]  ;;  %v2392_v52 = vld [vmem:[%s3478_s23 + $0x24] sm:$0xf0]  ;;  %v2435_v53 = vor.u32 %v2863_v47, %v2434_v46 }
  0x7f   : > { %761 = vmatpush.bf16.msra.mxu1 %v2443_v19  ;;  %v2391_v54 = vor.u32 %v2853_v50, %v2390_v49  ;;  %v2422_v55 = vld [vmem:[%s3478_s23 + $0x50] sm:$0xf]  ;;  %v2860_v56 = vld [vmem:[%s3478_s23 + $0x58] sm:$0xf0]  ;;  %v2395_v57 = vor.u32 %v2852_v51, %v2392_v52  ;;  %v2378_v58 = vld [vmem:[%s3478_s23] sm:$0xf] }
  0x80   : > { %774 = vmatpush.bf16.msra.mxu2 %v2459_v35  ;;  %v2850_v59 = vld [vmem:[%s3478_s23 + $0x8] sm:$0xf0]  ;;  %v2849_v60 = vld [vmem:[%s3478_s23 + $0x4] sm:$0xf]  ;;  %v2380_v61 = vld [vmem:[%s3478_s23 + $0xc] sm:$0xf0]  ;;  %v2423_v63 = vor.u32 %v2860_v56, %v2422_v55 }
  0x81   : > { %v3560_v62 = vld [vmem:[#allocation11] sm:$0xff]  ;;  %v2379_v0 = vor.u32 %v2850_v59, %v2378_v58  ;;  %v3562_v1 = vld [vmem:[#allocation11 + $0x8] sm:$0xff]  ;;  %v2410_v2 = vld [vmem:[%s3478_s23 + $0x38] sm:$0xf]  ;;  %v2383_v4 = vor.u32 %v2849_v60, %v2380_v61  ;;  %vm808_vm0 = vcmask 261120   ;;  %s3294_s21 = smov 96  }
  0x82   : > { %748 = vmatpush.bf16.msra.mxu0 %v2427_v24  ;;  %v2857_v3 = vld [vmem:[%s3478_s23 + $0x40] sm:$0xf0]  ;;  %v616_v5 = vpack.c.bf16 %v3562_v1, %v3560_v62  ;;  %v2398_v7 = vld [vmem:[%s3478_s23 + $0x20] sm:$0xf]  ;;  %v2854_v8 = vld [vmem:[%s3478_s23 + $0x28] sm:$0xf0] }
  0x83   : > { %762 = vmatpush.bf16.msra.mxu1 %v2431_v28  ;;  %v2411_v6 = vor.u32 %v2857_v3, %v2410_v2  ;;  %v2399_v9 = vor.u32 %v2854_v8, %v2398_v7  ;;  %v2386_v10 = vld [vmem:[%s3478_s23 + $0x8] sm:$0xf]  ;;  %v2851_v11 = vld [vmem:[%s3478_s23 + $0x10] sm:$0xf0]  ;;  %v3573_v13 = vld [vmem:[%s3504_s19] sm:$0xff]  ;;  %s3293_s23 = smov 64  }
  0x84   : > { %775 = vmatpush.bf16.msra.mxu2 %v2447_v44  ;;  %v2387_v12 = vor.u32 %v2851_v11, %v2386_v10  ;;  %v787_v14 = vperm.slane %v3573_v13, 0  ;;  %v794_v15 = vperm.slane %v3573_v13, 1  ;;  %v799_v28 = vperm.slane %v3573_v13, 2  ;;  %v3603_v35 = vld [vmem:[%s3923_s1] ss:$0 sm:$0xff]  ;;  %v2938_v51 = vld [vmem:[%s3485_s13 + $0x8] sm:$0xff] }
  0x85   : > { %vm844_vm1 = vcmask 1043456   ;;  %vm828_vm2 = vcmask 64512   ;;  %s3295_s25 = smov 32   ;;  %s2211_s12 = sshll.u32 %s3930_s8, 4  ;;  %s2212_s12 = int_to_ptr.hbm [resolvable:$true] %s2211_s12 }
  0x86   : > { %749 = vmatpush.bf16.msra.mxu0 %v2415_v36  ;;  %p2982_p7 = scmp.eq.s32.totalorder %s3364_s9, 1  ;;  %s3298_s29 = smov 128  }
  0x87   : > { %763 = vmatpush.bf16.msra.mxu1 %v2419_v40 }
  0x88   : > { %776 = vmatpush.bf16.msra.mxu2 %v2435_v53 }
  0x8a   : > { %750 = vmatpush.bf16.msra.mxu0 %v2403_v45 }
  0x8b   : > { %764 = vmatpush.bf16.msra.mxu1 %v2407_v48 }
  0x8c   : > { %777 = vmatpush.bf16.msra.mxu2 %v2423_v63 }
  0x8e   : > { %751 = vmatpush.bf16.msra.mxu0 %v2391_v54  ;;  %v2937_v54 = vld [vmem:[%s3485_s13] sm:$0xff] }
  0x8f   : > { %765 = vmatpush.bf16.msra.mxu1 %v2395_v57 }
  0x90   : > { %778 = vmatpush.bf16.msra.mxu2 %v2411_v6 }
  0x92   : > { %752 = vmatpush.bf16.msra.mxu0 %v2379_v0 }
  0x93   : > { %766 = vmatpush.bf16.msra.mxu1 %v2383_v4 }
  0x94   : > { %779 = vmatpush.bf16.msra.mxu2 %v2399_v9 }
  0x95   : > { %753 = vmatmul.bf16.vlgmr.msra.gmra.mxu0 %v616_v5 }
  0x96   : > { %767 = vmatmul.bf16.vlgmr.msra.gmra.mxu1 %v616_v5 }
  0x98   : > { %780 = vmatpush.bf16.msra.mxu2 %v2387_v12 }
  0x9b   : > { %781 = vmatmul.bf16.vlgmr.msra.gmra.mxu2 %v616_v5 }
  0x9c   : > { %986 = vmatpush.bf16.msrb.mxu2 %v2938_v51 }
  0xa0   : > { %987 = vmatpush.bf16.msrb.mxu2 %v2937_v54 }
 0x112   : > { %v754_v16 = vpop.f32.mrf.mxu0 }
 0x113   : > { %v788_v17 = vadd.f32 %v787_v14, %v754_v16  ;;  %v768_v18 = vpop.f32.mrf.mxu1 }
 0x114   : > { %v795_v19 = vadd.f32 %v794_v15, %v768_v18 }
 0x115   : > { %v790_v20 = vmul.f32 0.17677669, %v788_v17 }
 0x116   : > { %v797_v21 = vpack.c.bf16 %v795_v19, %v795_v19 }
 0x117   : > { %v792_v22 = vpack.c.bf16 %v790_v20, %v790_v20 }
 0x118   : > { %v872_v23 = vunpack.c.l.b16 %v797_v21  ;;  %v813_v24 = vsel %vm808_vm0, %v797_v21, 0 }
 0x119   : > { %822 = vmatpush.bf16.xpose.msra.mxu3 %v813_v24  ;;  %v867_v26 = vunpack.c.l.b16 %v792_v22 }
 0x11a   : > { %v3582_v25 = vpack.c.b16 %v872_v23, %v872_v23 }
 0x11b   : > { %v3589_v27 = vpack.c.b16 %v867_v26, %v867_v26 }
 0x11c   : > { %995 = vrot.lane.b32.xlu2 %v3582_v25, %s3293_s23  ;;  %874 = vrot.lane.b32.xlu1 %v3582_v25, %s3294_s21 }
 0x11e   : > { %v782_v29 = vpop.f32.mrf.mxu2 }
 0x11f   : > { %v800_v30 = vadd.f32 %v799_v28, %v782_v29 }
 0x120   : > { %2472 = vmatmul.msk.bf16.vlgmr.msra.gmra.mxu3 %vm808_vm0, %v792_v22 }
 0x121   : > { %v802_v31 = vpack.c.bf16 %v800_v30, %v800_v30 }
 0x123   : > { %v846_v32 = vsel %vm844_vm1, %v802_v31, 0  ;;  %v908_v2 = vunpack.c.l.b16 %v802_v31  ;;  %v2940_v31 = vld [vmem:[%s3485_s13 + $0x18] sm:$0xff] }
 0x124   : > { %993 = vrot.lane.b32.xlu2 %v3589_v27, %s3293_s23  ;;  %869 = vrot.lane.b32.xlu1 %v3589_v27, %s3294_s21 }
 0x125   : > { %855 = vmatpush.bf16.msrb.mxu3 %v846_v32  ;;  %v3619_v4 = vpack.c.b16 %v908_v2, %v908_v2  ;;  %958 = vmatpush.bf16.msrb.mxu1 %v2940_v31  ;;  %v2939_v32 = vld [vmem:[%s3485_s13 + $0x10] sm:$0xff]  ;;  %v2946_v31 = vld [vmem:[%s3485_s13 + $0x8] sm:$0xff] }
 0x126   : > { %v784_v6 = vpop.f32.mrf.mxu2 }
 0x127   : > { %v801_v24 = vadd.f32 %v799_v28, %v784_v6  ;;  %v2942_v28 = vld [vmem:[%s3485_s13 + $0x28] sm:$0xff] }
 0x129   : > { %959 = vmatpush.bf16.msrb.mxu1 %v2939_v32 }
 0x12d   : > { %1076 = vmatpush.bf16.msra.mxu1 %v2942_v28 }
 0x176   : > { %v996_v48 = vpop.permute.xlu2 %995 }
 0x177   : > { %v1001_v50 = vsel %vm808_vm0, %v996_v48, 0 }
 0x17e   : > { %v994_v53 = vpop.permute.xlu2 %993 }
 0x18e   : > { %v875_v33 = vpop.permute.xlu1 %874 }
 0x18f   : > { %v880_v34 = vsel %vm808_vm0, %v875_v33, 0 }
 0x190   : > { %889 = vmatpush.bf16.xpose.msra.mxu3 %v880_v34 }
 0x196   : > { %v870_v52 = vpop.permute.xlu1 %869 }
 0x1a3   : > { %v824_v36 = vpop.f32.mrf.mxu3 }
 0x1a4   : > { %v825_v37 = vadd.f32 %v3603_v35, %v824_v36 }
 0x1a6   : > { %v829_v38 = vsel %vm828_vm2, %v825_v37, -inf }
 0x1a7   : > { %830 = vmax.xlane.f32.xlu0 %v829_v38 }
 0x1ab   : > { %v826_v39 = vpop.f32.mrf.mxu3 }
 0x21a   : > { %v831_v40 = vpop.xlane.xlu0 %830 }
 0x21b   : > { %v832_v41 = vsub.f32 %v825_v37, %v831_v40 }
 0x21d   : > { %v833_v42 = vmul.f32 1.442695, %v832_v41 }
 0x21f   : > { %3032 = vpow2.f32 %v833_v42 }
 0x225   : > { %v3033_v43 = vpop.eup %3032 }
 0x226   : > { %v835_v44 = vsel %vm828_vm2, %v3033_v43, 0.0 }
 0x227   : > { %836 = vadd.xlane.f32.xlu0 %v835_v44  ;;  %v2941_v44 = vld [vmem:[%s3485_s13 + $0x20] sm:$0xff] }
 0x228   : > { %1077 = vmatpush.bf16.msra.mxu1 %v2941_v44 }
 0x29a   : > { %v837_v45 = vpop.xlane.xlu0 %836 }
 0x29b   : > { %3034 = vrcp.f32 %v837_v45  ;;  %v756_v45 = vpop.f32.mrf.mxu0 }
 0x2a1   : > { %v3035_v46 = vpop.eup %3034 }
 0x2a2   : > { %v839_v47 = vmul.f32 %v3035_v46, %v3033_v43  ;;  %v770_v46 = vpop.f32.mrf.mxu1 }
 0x2a4   : > { %v840_v49 = vpack.c.bf16 %v839_v47, %v839_v47  ;;  %v796_v47 = vadd.f32 %v794_v15, %v770_v46 }
 0x2a6   : > { %2473 = vmatmul.msk.bf16.vlgmr.msrb.gmra.mxu3 %vm828_vm2, %v840_v49  ;;  %v798_v48 = vpack.c.bf16 %v796_v47, %v796_v47 }
 0x2a7   : > { %1010 = vmatpush.bf16.xpose.msrb.mxu3 %v1001_v50 }
 0x2a8   : > { %v1219_v51 = vsel %vm808_vm0, %v798_v48, 0 }
 0x2b6   : > { %2474 = vmatmul.msk.bf16.vlgmr.msra.gmra.mxu3 %vm808_vm0, %v870_v52 }
 0x2c6   : > { %2498 = vmatmul.msk.bf16.vlgmr.msrb.gmra.mxu3 %vm808_vm0, %v994_v53 }
 0x329   : > { %v857_v55 = vpop.f32.mrf.mxu3 }
 0x32a   : > { %v861_v56 = vpack.c.bf16 %v857_v55, %v857_v55 }
 0x32c   : > { %2497 = vmatmul.msk.bf16.vlgmr.msrb.gmra.mxu2 %vm808_vm0, %v861_v56 }
 0x331   : > { %v859_v57 = vpop.f32.mrf.mxu3 }
 0x339   : > { %v891_v58 = vpop.f32.mrf.mxu3 }
 0x33a   : > { %v892_v59 = vadd.f32 %v3603_v35, %v891_v58 }
 0x33c   : > { %v895_v60 = vsel %vm828_vm2, %v892_v59, -inf }
 0x33d   : > { %896 = vmax.xlane.f32.xlu0 %v895_v60 }
 0x341   : > { %v893_v61 = vpop.f32.mrf.mxu3 }
 0x349   : > { %v1012_v63 = vpop.f32.mrf.mxu3 }
 0x34a   : > { %v1013_v0 = vadd.f32 %v3603_v35, %v1012_v63  ;;  %v1276_v63 = vunpack.c.l.b16 %v798_v48 }
 0x34c   : > { %v1016_v3 = vsel %vm828_vm2, %v1013_v0, -inf }
 0x34d   : > { %1017 = vmax.xlane.f32.xlu1 %v1016_v3 }
 0x351   : > { %v1014_v5 = vpop.f32.mrf.mxu3  ;;  %910 = vrot.lane.b32.xlu0 %v3619_v4, %s3294_s21 }
 0x366   : > { %1086 = vrot.lane.b32.xlu1 %v3582_v25, %s3295_s25  ;;  %v3634_v25 = vpack.c.bf16 %v801_v24, %v801_v24 }
 0x368   : > { %v1250_v30 = vsel %vm844_vm1, %v3634_v25, 0 }
 0x3af   : > { %v3625_v7 = vpop.f32.mrf.mxu2 }
 0x3b0   : > { %v897_v8 = vpop.xlane.xlu0 %896 }
 0x3b1   : > { %v898_v9 = vsub.f32 %v892_v59, %v897_v8  ;;  %v789_v59 = vadd.f32 %v787_v14, %v756_v45  ;;  %v3666_v14 = vld [vmem:[%s3923_s1 + $0x1] ss:$0 sm:$0xff] }
 0x3b3   : > { %v899_v10 = vmul.f32 1.442695, %v898_v9  ;;  %v791_v60 = vmul.f32 0.17677669, %v789_v59 }
 0x3b5   : > { %3036 = vpow2.f32 %v899_v10  ;;  %v793_v61 = vpack.c.bf16 %v791_v60, %v791_v60 }
 0x3b7   : > { %v991_v11 = vpop.f32.mrf.mxu2 }
 0x3bb   : > { %v3037_v12 = vpop.eup %3036 }
 0x3bc   : > { %v901_v16 = vsel %vm828_vm2, %v3037_v12, 0.0 }
 0x3bd   : > { %902 = vadd.xlane.f32.xlu2 %v901_v16  ;;  %v1271_v16 = vunpack.c.l.b16 %v793_v61 }
 0x3c0   : > { %v1018_v17 = vpop.xlane.xlu1 %1017 }
 0x3c1   : > { %v1019_v18 = vsub.f32 %v1013_v0, %v1018_v17  ;;  %v1277_v0 = vpack.c.b16 %v1276_v63, %v1276_v63  ;;  %v1272_v17 = vpack.c.b16 %v1271_v16, %v1271_v16 }
 0x3c3   : > { %v1020_v19 = vmul.f32 1.442695, %v1019_v18  ;;  %v911_v20 = vpop.permute.xlu0 %910 }
 0x3c4   : > { %v916_v21 = vsel %vm844_vm1, %v911_v20, 0 }
 0x3c5   : > { %3038 = vpow2.f32 %v1020_v19  ;;  %925 = vmatpush.bf16.msrb.mxu0 %v916_v21 }
 0x3cb   : > { %v3039_v22 = vpop.eup %3038 }
 0x3cc   : > { %v1022_v23 = vsel %vm828_vm2, %v3039_v22, 0.0 }
 0x3cd   : > { %1023 = vadd.xlane.f32.xlu0 %v1022_v23 }
 0x3d5   : > { %1028 = vrot.lane.b32.xlu2 %v3619_v4, %s3293_s23 }
 0x3d8   : > { %v1087_v26 = vpop.permute.xlu1 %1086 }
 0x3d9   : > { %v1092_v29 = vsel %vm808_vm0, %v1087_v26, 0 }
 0x3da   : > { %1101 = vmatpush.bf16.xpose.msra.mxu2 %v1092_v29 }
 0x3dd   : > { %1084 = vrot.lane.b32.xlu2 %v3589_v27, %s3295_s25 }
 0x3e2   : > { %1259 = vmatpush.bf16.msrb.mxu2 %v1250_v30 }
 0x430   : > { %v903_v33 = vpop.xlane.xlu2 %902 }
 0x431   : > { %3040 = vrcp.f32 %v903_v33 }
 0x437   : > { %v3041_v34 = vpop.eup %3040 }
 0x438   : > { %v905_v36 = vmul.f32 %v3041_v34, %v3037_v12  ;;  %v1029_v37 = vpop.permute.xlu2 %1028  ;;  %v2945_v34 = vld [vmem:[%s3485_s13] sm:$0xff] }
 0x439   : > { %v1034_v38 = vsel %vm844_vm1, %v1029_v37, 0 }
 0x43a   : > { %1043 = vmatpush.bf16.msra.mxu0 %v1034_v38  ;;  %v906_v39 = vpack.c.bf16 %v905_v36, %v905_v36 }
 0x43c   : > { %2475 = vmatmul.msk.bf16.vlgmr.msrb.gmra.mxu0 %vm828_vm2, %v906_v39 }
 0x440   : > { %v1085_v40 = vpop.permute.xlu2 %1084  ;;  %v1024_v27 = vpop.xlane.xlu0 %1023 }
 0x441   : > { %3042 = vrcp.f32 %v1024_v27  ;;  %2513 = vmatmul.msk.bf16.vlgmr.msra.gmra.mxu2 %vm808_vm0, %v1085_v40 }
 0x442   : > { %1389 = vmatpush.bf16.msra.mxu2 %v2946_v31  ;;  %v3296_v31 = vmov 128.0  }
 0x446   : > { %1390 = vmatpush.bf16.msra.mxu2 %v2945_v34 }
 0x447   : > { %v3043_v41 = vpop.eup %3042 }
 0x448   : > { %v1026_v42 = vmul.f32 %v3043_v41, %v3039_v22 }
 0x44a   : > { %v1027_v43 = vpack.c.bf16 %v1026_v42, %v1026_v42 }
 0x44c   : > { %2499 = vmatmul.msk.bf16.vlgmr.msra.gmra.mxu0 %vm828_vm2, %v1027_v43 }
 0x4b9   : > { %v927_v49 = vpop.f32.mrf.mxu0 }
 0x4ba   : > { %v931_v50 = vpack.c.bf16 %v927_v49, %v927_v49  ;;  %v2944_v49 = vld [vmem:[%s3485_s13 + $0x38] sm:$0xff] }
 0x4bb   : > { %1167 = vmatpush.bf16.msrb.mxu0 %v2944_v49 }
 0x4bc   : > { %2488 = vmatmul.msk.bf16.vlgmr.msrb.gmra.mxu1 %vm808_vm0, %v931_v50  ;;  %v2943_v50 = vld [vmem:[%s3485_s13 + $0x30] sm:$0xff] }
 0x4bd   : > { %1228 = vmatpush.bf16.xpose.msrb.mxu1 %v1219_v51 }
 0x4bf   : > { %1168 = vmatpush.bf16.msrb.mxu0 %v2943_v50 }
 0x4c1   : > { %v929_v52 = vpop.f32.mrf.mxu0 }
 0x4c4   : > { %v1103_v53 = vpop.f32.mrf.mxu2 }
 0x4c5   : > { %v1104_v54 = vadd.f32 %v3603_v35, %v1103_v53 }
 0x4c7   : > { %v1107_v55 = vsel %vm828_vm2, %v1104_v54, -inf }
 0x4c8   : > { %1108 = vmax.xlane.f32.xlu2 %v1107_v55 }
 0x4c9   : > { %v1045_v56 = vpop.f32.mrf.mxu0 }
 0x4ca   : > { %v1049_v57 = vpack.c.bf16 %v1045_v56, %v1045_v56 }
 0x4cc   : > { %2512 = vmatmul.msk.bf16.vlgmr.msra.gmra.mxu1 %vm808_vm0, %v1049_v57  ;;  %v1105_v15 = vpop.f32.mrf.mxu2 }
 0x4d1   : > { %v1047_v58 = vpop.f32.mrf.mxu0 }
 0x4dc   : > { %2529 = vmatmul.msk.bf16.vlgmr.msrb.gmra.mxu1 %vm808_vm0, %v793_v61 }
 0x4e0   : > { %1398 = vrot.lane.b32.xlu2 %v1277_v0, %s3293_s23 }
 0x539   : > { %v961_v35 = vpop.f32.mrf.mxu1 }
 0x53a   : > { %v990_v3 = vadd.f32 %v3625_v7, %v961_v35  ;;  %v1312_v35 = vunpack.c.l.b16 %v3634_v25 }
 0x53b   : > { %v1109_v7 = vpop.xlane.xlu2 %1108 }
 0x53c   : > { %v1110_v20 = vsub.f32 %v1104_v54, %v1109_v7 }
 0x53e   : > { %v1111_v22 = vmul.f32 1.442695, %v1110_v20 }
 0x541   : > { %v963_v2 = vpop.f32.mrf.mxu1 }
 0x542   : > { %v1313_v2 = vpack.c.b16 %v1312_v35, %v1312_v35  ;;  %v2949_v35 = vld [vmem:[%s3485_s13 + $0x20] sm:$0xff] }
 0x543   : > { %v1399_v27 = vpop.permute.xlu2 %1398 }
 0x544   : > { %v1404_v43 = vsel %vm808_vm0, %v1399_v27, 0 }
 0x549   : > { %v1079_v5 = vpop.f32.mrf.mxu1 }
 0x54a   : > { %v3661_v6 = vadd.f32 %v1079_v5, %v990_v3 }
 0x551   : > { %v1081_v8 = vpop.f32.mrf.mxu1 }
 0x552   : > { %v1175_v8 = vperm.slane %v3573_v13, 3  ;;  %v2709_v13 = vld [vmem:[%s3491_s22 + $0xf8] sm:$0xf0] }
 0x559   : > { %v1230_v9 = vpop.f32.mrf.mxu1 }
 0x55a   : > { %v1231_v10 = vadd.f32 %v3666_v14, %v1230_v9 }
 0x55c   : > { %v1234_v11 = vsel %vm828_vm2, %v1231_v10, -inf }
 0x55d   : > { %1235 = vmax.xlane.f32.xlu1 %v1234_v11 }
 0x561   : > { %v1232_v12 = vpop.f32.mrf.mxu1 }
 0x576   : > { %1273 = vrot.lane.b32.xlu1 %v1272_v17, %s3294_s21 }
 0x5d0   : > { %v1236_v18 = vpop.xlane.xlu1 %1235 }
 0x5d1   : > { %v1237_v19 = vsub.f32 %v1231_v10, %v1236_v18 }
 0x5d3   : > { %v1238_v21 = vmul.f32 1.442695, %v1237_v19 }
 0x5d5   : > { %3044 = vpow2.f32 %v1238_v21 }
 0x5d6   : > { %3046 = vpow2.f32 %v1111_v22 }
 0x5db   : > { %v3045_v23 = vpop.eup %3044 }
 0x5dc   : > { %v1240_v24 = vsel %vm828_vm2, %v3045_v23, 0.0  ;;  %v3047_v26 = vpop.eup %3046 }
 0x5dd   : > { %1241 = vadd.xlane.f32.xlu0 %v1240_v24  ;;  %v1113_v29 = vsel %vm828_vm2, %v3047_v26, 0.0 }
 0x5e5   : > { %1114 = vadd.xlane.f32.xlu0 %v1113_v29 }
 0x5e8   : > { %v1274_v46 = vpop.permute.xlu1 %1273 }
 0x5f9   : > { %1119 = vrot.lane.b32.xlu0 %v3619_v4, %s3295_s25 }
 0x601   : > { %1278 = vrot.lane.b32.xlu0 %v1277_v0, %s3294_s21 }
 0x609   : > { %1488 = vrot.lane.b32.xlu0 %v1277_v0, %s3295_s25 }
 0x611   : > { %1486 = vrot.lane.b32.xlu0 %v1272_v17, %s3295_s25 }
 0x619   : > { %1396 = vrot.lane.b32.xlu0 %v1272_v17, %s3293_s23 }
 0x650   : > { %v1242_v30 = vpop.xlane.xlu0 %1241 }
 0x651   : > { %3048 = vrcp.f32 %v1242_v30 }
 0x657   : > { %v3049_v32 = vpop.eup %3048 }
 0x658   : > { %v1244_v28 = vmul.f32 %v3049_v32, %v3045_v23  ;;  %v1115_v4 = vpop.xlane.xlu0 %1114 }
 0x659   : > { %3050 = vrcp.f32 %v1115_v4 }
 0x65a   : > { %v1245_v33 = vpack.c.bf16 %v1244_v28, %v1244_v28 }
 0x65c   : > { %2530 = vmatmul.msk.bf16.vlgmr.msrb.gmra.mxu2 %vm828_vm2, %v1245_v33 }
 0x65f   : > { %v3051_v36 = vpop.eup %3050 }
 0x660   : > { %v1117_v37 = vmul.f32 %v3051_v36, %v3047_v26 }
 0x662   : > { %v1118_v40 = vpack.c.bf16 %v1117_v37, %v1117_v37 }
 0x66b   : > { %v1120_v38 = vpop.permute.xlu0 %1119 }
 0x66c   : > { %v1125_v39 = vsel %vm844_vm1, %v1120_v38, 0 }
 0x66d   : > { %1134 = vmatpush.bf16.msra.mxu3 %v1125_v39 }
 0x670   : > { %2514 = vmatmul.msk.bf16.vlgmr.msra.gmra.mxu3 %vm828_vm2, %v1118_v40 }
 0x673   : > { %v1279_v41 = vpop.permute.xlu0 %1278 }
 0x674   : > { %v1284_v42 = vsel %vm808_vm0, %v1279_v41, 0 }
 0x675   : > { %1293 = vmatpush.bf16.xpose.msrb.mxu3 %v1284_v42 }
 0x67b   : > { %v1489_v44 = vpop.permute.xlu0 %1488 }
 0x67c   : > { %v1494_v45 = vsel %vm808_vm0, %v1489_v44, 0 }
 0x67d   : > { %1413 = vmatpush.bf16.xpose.msra.mxu3 %v1404_v43  ;;  %1503 = vmatpush.bf16.xpose.msrb.mxu2 %v1494_v45 }
 0x680   : > { %2531 = vmatmul.msk.bf16.vlgmr.msrb.gmra.mxu3 %vm808_vm0, %v1274_v46 }
 0x683   : > { %v1487_v47 = vpop.permute.xlu0 %1486 }
 0x68b   : > { %v1397_v48 = vpop.permute.xlu0 %1396 }
 0x690   : > { %2555 = vmatmul.msk.bf16.vlgmr.msra.gmra.mxu3 %vm808_vm0, %v1397_v48 }
 0x6df   : > { %v1261_v51 = vpop.f32.mrf.mxu2 }
 0x6e0   : > { %v1265_v52 = vpack.c.bf16 %v1261_v51, %v1261_v51 }
 0x6e2   : > { %2554 = vmatmul.msk.bf16.vlgmr.msra.gmra.mxu2 %vm808_vm0, %v1265_v52 }
 0x6e7   : > { %v1263_v53 = vpop.f32.mrf.mxu2 }
 0x6f2   : > { %2570 = vmatmul.msk.bf16.vlgmr.msrb.gmra.mxu2 %vm808_vm0, %v1487_v47 }
 0x6f3   : > { %v1136_v54 = vpop.f32.mrf.mxu3 }
 0x6f4   : > { %v1140_v55 = vpack.c.bf16 %v1136_v54, %v1136_v54 }
 0x6f6   : > { %2527 = vmatmul.msk.bf16.vlgmr.msrb.gmra.mxu0 %vm808_vm0, %v1140_v55  ;;  %v2948_v55 = vld [vmem:[%s3485_s13 + $0x18] sm:$0xff] }
 0x6f7   : > { %1361 = vmatpush.bf16.msra.mxu1 %v2948_v55  ;;  %v2895_v55 = vld [vmem:[%s3491_s22 + $0xac] sm:$0xf0] }
 0x6fb   : > { %v1138_v56 = vpop.f32.mrf.mxu3 }
 0x6fc   : > { %v2947_v56 = vld [vmem:[%s3485_s13 + $0x10] sm:$0xff] }
 0x6fd   : > { %1362 = vmatpush.bf16.msra.mxu1 %v2947_v56  ;;  %v2893_v56 = vld [vmem:[%s3491_s22 + $0xa4] sm:$0xf] }
 0x703   : > { %v1295_v57 = vpop.f32.mrf.mxu3 }
 0x704   : > { %v1296_v15 = vadd.f32 %v3666_v14, %v1295_v57  ;;  %v2950_v57 = vld [vmem:[%s3485_s13 + $0x28] sm:$0xff] }
 0x705   : > { %1478 = vmatpush.bf16.msrb.mxu1 %v2950_v57 }
 0x706   : > { %v1299_v58 = vsel %vm828_vm2, %v1296_v15, -inf }
 0x707   : > { %1300 = vmax.xlane.f32.xlu1 %v1299_v58 }
 0x709   : > { %1479 = vmatpush.bf16.msrb.mxu1 %v2949_v35 }
 0x70b   : > { %v1297_v59 = vpop.f32.mrf.mxu3 }
 0x713   : > { %v1415_v60 = vpop.f32.mrf.mxu3 }
 0x714   : > { %v1416_v61 = vadd.f32 %v3666_v14, %v1415_v60 }
 0x716   : > { %v1419_v63 = vsel %vm828_vm2, %v1416_v61, -inf }
 0x717   : > { %1420 = vmax.xlane.f32.xlu2 %v1419_v63 }
 0x71b   : > { %v1417_v0 = vpop.f32.mrf.mxu3 }
 0x72f   : > { %1314 = vrot.lane.b32.xlu2 %v1313_v2, %s3294_s21 }
 0x765   : > { %v3700_v3 = vpop.f32.mrf.mxu2 }
 0x76d   : > { %v1394_v5 = vpop.f32.mrf.mxu2 }
 0x773   : > { %v1170_v9 = vpop.f32.mrf.mxu0 }
 0x774   : > { %v1174_v10 = vadd.f32 %v1170_v9, %v3661_v6 }
 0x775   : > { %v1505_v11 = vpop.f32.mrf.mxu2 }
 0x776   : > { %v1176_v12 = vadd.f32 %v1175_v8, %v1174_v10  ;;  %v1506_v16 = vadd.f32 %v3666_v14, %v1505_v11 }
 0x778   : > { %v1509_v17 = vsel %vm828_vm2, %v1506_v16, -inf  ;;  %v1177_v25 = vadd.f32 %v1176_v12, %v3560_v62  ;;  %v2952_v12 = vld [vmem:[%s3485_s13 + $0x38] sm:$0xff] }
 0x779   : > { %1510 = vmax.xlane.f32.xlu0 %v1509_v17 }
 0x77a   : > { %1178 = vadd.xlane.f32.xlu2 %v1177_v25  ;;  %v1301_v7 = vpop.xlane.xlu1 %1300 }
 0x77b   : > { %v1302_v18 = vsub.f32 %v1296_v15, %v1301_v7  ;;  %v1172_v19 = vpop.f32.mrf.mxu0 }
 0x77d   : > { %v1303_v20 = vmul.f32 1.442695, %v1302_v18  ;;  %v1507_v21 = vpop.f32.mrf.mxu2 }
 0x77f   : > { %3052 = vpow2.f32 %v1303_v20 }
 0x785   : > { %v3053_v22 = vpop.eup %3052 }
 0x786   : > { %v1305_v6 = vsel %vm828_vm2, %v3053_v22, 0.0 }
 0x787   : > { %1306 = vadd.xlane.f32.xlu1 %v1305_v6 }
 0x78a   : > { %v1421_v23 = vpop.xlane.xlu2 %1420 }
 0x78b   : > { %v1422_v24 = vsub.f32 %v1416_v61, %v1421_v23 }
 0x78d   : > { %v1423_v26 = vmul.f32 1.442695, %v1422_v24 }
 0x78f   : > { %3054 = vpow2.f32 %v1423_v26 }
 0x790   : > { %3056 = vrcp.f32 %v3296_v31  ;;  %v2901_v31 = vld [vmem:[%s3491_s22 + $0xe4] sm:$0xf] }
 0x792   : > { %v1315_v14 = vpop.permute.xlu2 %1314 }
 0x793   : > { %v1320_v29 = vsel %vm844_vm1, %v1315_v14, 0 }
 0x794   : > { %1329 = vmatpush.bf16.msra.mxu0 %v1320_v29 }
 0x795   : > { %v3055_v62 = vpop.eup %3054 }
 0x796   : > { %v1425_v30 = vsel %vm828_vm2, %v3055_v62, 0.0  ;;  %v3057_v32 = vpop.eup %3056 }
 0x797   : > { %1426 = vadd.xlane.f32.xlu1 %v1425_v30  ;;  %v1181_v28 = vmul.f32 128.0, %v3057_v32  ;;  %vm1185_vm3 = vweird.f32 %v3057_v32  ;;  %v2903_v30 = vld [vmem:[%s3491_s22 + $0xec] sm:$0xf0] }
 0x799   : > { %v1182_v33 = vsub.f32 1.0, %v1181_v28  ;;  %v2707_v28 = vld [vmem:[%s3491_s22 + $0xe8] sm:$0xf] }
 0x79b   : > { %v1183_v34 = vmul.f32 %v3057_v32, %v1182_v33  ;;  %v2904_v33 = vld [vmem:[%s3491_s22 + $0xf4] sm:$0xf0] }
 0x79d   : > { %v1184_v4 = vadd.f32 %v3057_v32, %v1183_v34 }
 0x79f   : > { %v3713_v36 = vsel %vm1185_vm3, %v3057_v32, %v1184_v4  ;;  %v2708_v4 = vor.u32 %v2904_v33, %v2707_v28  ;;  %v2619_v28 = vld [vmem:[%s3491_s22 + $0x40] sm:$0xf]  ;;  %v2883_v33 = vld [vmem:[%s3491_s22 + $0x4c] sm:$0xf0] }
 0x7b0   : > { %1431 = vrot.lane.b32.xlu1 %v1313_v2, %s3293_s23 }
 0x7ec   : > { %v1511_v37 = vpop.xlane.xlu0 %1510 }
 0x7ed   : > { %v1512_v38 = vsub.f32 %v1506_v16, %v1511_v37  ;;  %v1179_v39 = vpop.xlane.xlu2 %1178  ;;  %v2951_v16 = vld [vmem:[%s3485_s13 + $0x30] sm:$0xff]  ;;  %v2902_v37 = vld [vmem:[%s3491_s22 + $0xec] sm:$0xf]  ;;  %s3297_s13 = smov [#allocation11]  }
 0x7ee   : > { %v1187_v40 = vmul.f32 %v3713_v36, %v1179_v39 }
 0x7ef   : > { %v1513_v27 = vmul.f32 1.442695, %v1512_v38 }
 0x7f0   : > { %v3716_v41 = vsub.f32 %v1177_v25, %v1187_v40 }
 0x7f1   : > { %3058 = vpow2.f32 %v1513_v27  ;;  %v2683_v27 = vld [vmem:[%s3491_s22 + $0xc0] sm:$0xf] }
 0x7f2   : > { %v1189_v42 = vmul.f32 %v3716_v41, %v3716_v41 }
 0x7f4   : > { %1190 = vadd.xlane.f32.xlu1 %v1189_v42  ;;  %v2899_v42 = vld [vmem:[%s3491_s22 + $0xcc] sm:$0xf0] }
 0x7f7   : > { %v3059_v43 = vpop.eup %3058 }
 0x7f8   : > { %v1515_v44 = vsel %vm828_vm2, %v3059_v43, 0.0 }
 0x7f9   : > { %1516 = vadd.xlane.f32.xlu0 %v1515_v44  ;;  %v2684_v44 = vor.u32 %v2899_v42, %v2683_v27  ;;  %v2629_v27 = vld [vmem:[%s3491_s22 + $0x58] sm:$0xf0] }
 0x7fa   : > { %v1307_v45 = vpop.xlane.xlu1 %1306 }
 0x7fb   : > { %3060 = vrcp.f32 %v1307_v45  ;;  %v2685_v45 = vld [vmem:[%s3491_s22 + $0xd0] sm:$0xf0] }
 0x801   : > { %v3061_v46 = vpop.eup %3060 }
 0x802   : > { %v1309_v47 = vmul.f32 %v3061_v46, %v3053_v22  ;;  %v2691_v46 = vld [vmem:[%s3491_s22 + $0xc8] sm:$0xf] }
 0x804   : > { %v1310_v48 = vpack.c.bf16 %v1309_v47, %v1309_v47  ;;  %v2900_v47 = vld [vmem:[%s3491_s22 + $0xd4] sm:$0xf0] }
 0x806   : > { %2532 = vmatmul.msk.bf16.vlgmr.msra.gmra.mxu0 %vm828_vm2, %v1310_v48 }
 0x80a   : > { %v1427_v49 = vpop.xlane.xlu1 %1426 }
 0x80b   : > { %3062 = vrcp.f32 %v1427_v49  ;;  %v2692_v49 = vor.u32 %v2900_v47, %v2691_v46  ;;  %v2605_v47 = vld [vmem:[%s3491_s22 + $0x30] sm:$0xf0] }
 0x80d   : > { %1521 = vrot.lane.b32.xlu0 %v1313_v2, %s3295_s25 }
 0x811   : > { %v3063_v50 = vpop.eup %3062 }
 0x812   : > { %v1429_v51 = vmul.f32 %v3063_v50, %v3055_v62  ;;  %v2699_v62 = vld [vmem:[%s3491_s22 + $0xe0] sm:$0xf]  ;;  %v2898_v50 = vld [vmem:[%s3491_s22 + $0xcc] sm:$0xf] }
 0x813   : > { %v2700_v32 = vor.u32 %v2903_v30, %v2699_v62 }
 0x814   : > { %v1430_v54 = vpack.c.bf16 %v1429_v51, %v1429_v51  ;;  %v2693_v51 = vld [vmem:[%s3491_s22 + $0xd8] sm:$0xf0] }
 0x822   : > { %v1432_v52 = vpop.permute.xlu1 %1431 }
 0x823   : > { %v1437_v53 = vsel %vm844_vm1, %v1432_v52, 0  ;;  %v2696_v52 = vor.u32 %v2898_v50, %v2693_v51 }
 0x824   : > { %1446 = vmatpush.bf16.msrb.mxu0 %v1437_v53 }
 0x827   : > { %2556 = vmatmul.msk.bf16.vlgmr.msrb.gmra.mxu0 %vm828_vm2, %v1430_v54  ;;  %v2667_v54 = vld [vmem:[%s3491_s22 + $0xa0] sm:$0xf] }
 0x828   : > { %1568 = vmatpush.bf16.msra.mxu0 %v2952_v12  ;;  %v2668_v57 = vor.u32 %v2895_v55, %v2667_v54  ;;  %v2653_v12 = vld [vmem:[%s3491_s22 + $0x90] sm:$0xf0]  ;;  %v2587_v54 = vld [vmem:[%s3491_s22] sm:$0xf] }
 0x82c   : > { %1569 = vmatpush.bf16.msra.mxu0 %v2951_v16  ;;  %v2659_v16 = vld [vmem:[%s3491_s22 + $0x88] sm:$0xf] }
 0x867   : > { %v1191_v53 = vpop.xlane.xlu1 %1190 }
 0x868   : > { %v1192_v35 = vmul.f32 %v1191_v53, %v3713_v36  ;;  %v2613_v53 = vld [vmem:[%s3491_s22 + $0x38] sm:$0xf0] }
 0x86c   : > { %v1517_v15 = vpop.xlane.xlu0 %1516 }
 0x86d   : > { %3064 = vrcp.f32 %v1517_v15  ;;  %v2669_v15 = vld [vmem:[%s3491_s22 + $0xb0] sm:$0xf0] }
 0x873   : > { %v3065_v58 = vpop.eup %3064 }
 0x874   : > { %v1519_v59 = vmul.f32 %v3065_v58, %v3059_v43  ;;  %v2897_v43 = vld [vmem:[%s3491_s22 + $0xc4] sm:$0xf]  ;;  %v2675_v58 = vld [vmem:[%s3491_s22 + $0xa8] sm:$0xf] }
 0x875   : > { %v2688_v48 = vor.u32 %v2897_v43, %v2685_v45  ;;  %v2603_v43 = vld [vmem:[%s3491_s22 + $0x20] sm:$0xf]  ;;  %v2877_v45 = vld [vmem:[%s3491_s22 + $0x24] sm:$0xf] }
 0x876   : > { %v1520_v63 = vpack.c.bf16 %v1519_v59, %v1519_v59  ;;  %v2896_v59 = vld [vmem:[%s3491_s22 + $0xb4] sm:$0xf0]  ;;  %v2608_v50 = vor.u32 %v2877_v45, %v2605_v47  ;;  %v2917_v47 = vld [vmem:[%s3493_s11 + $0x60] sm:$0xff] }
 0x877   : > { %v2908_v45 = vld [vmem:[%s3493_s11 + $0x18] sm:$0xff] }
 0x87f   : > { %v1522_v60 = vpop.permute.xlu0 %1521 }
 0x880   : > { %v1527_v61 = vsel %vm844_vm1, %v1522_v60, 0  ;;  %v2672_v60 = vor.u32 %v2893_v56, %v2669_v15  ;;  %v2873_v15 = vld [vmem:[%s3491_s22 + $0x4] sm:$0xf] }
 0x881   : > { %1536 = vmatpush.bf16.msrb.mxu3 %v1527_v61  ;;  %v2676_v61 = vor.u32 %v2896_v59, %v2675_v58  ;;  %v2589_v58 = vld [vmem:[%s3491_s22 + $0x10] sm:$0xf0] }
 0x883   : > { %v1331_v0 = vpop.f32.mrf.mxu0 }
 0x884   : > { %v1335_v2 = vpack.c.bf16 %v1331_v0, %v1331_v0  ;;  %2571 = vmatmul.msk.bf16.vlgmr.msrb.gmra.mxu3 %vm828_vm2, %v1520_v63  ;;  %v2894_v63 = vld [vmem:[%s3491_s22 + $0xac] sm:$0xf]  ;;  %v2677_v0 = vld [vmem:[%s3491_s22 + $0xb8] sm:$0xf0] }
 0x885   : > { %1801 = vmatpush.bf16.msra.mxu3 %v2708_v4  ;;  %v2620_v4 = vor.u32 %v2883_v33, %v2619_v28  ;;  %v2936_v33 = vld [vmem:[%s3493_s11 + $0xf8] sm:$0xff] }
 0x886   : > { %2545 = vmatmul.msk.bf16.vlgmr.msra.gmra.mxu1 %vm808_vm0, %v1335_v2  ;;  %v2680_v2 = vor.u32 %v2894_v63, %v2677_v0  ;;  %v2876_v63 = vld [vmem:[%s3491_s22 + $0x14] sm:$0xf0]  ;;  %v2874_v0 = vld [vmem:[%s3491_s22 + $0xc] sm:$0xf] }
 0x887   : > { %1773 = vmatpush.bf16.msra.mxu1 %v2700_v32  ;;  %v2645_v32 = vld [vmem:[%s3491_s22 + $0x78] sm:$0xf0] }
 0x889   : > { %1802 = vmatpush.bf16.msra.mxu3 %v2692_v49  ;;  %v2880_v49 = vld [vmem:[%s3491_s22 + $0x34] sm:$0xf0] }
 0x88b   : > { %v1333_v5 = vpop.f32.mrf.mxu0  ;;  %1774 = vmatpush.bf16.msra.mxu1 %v2684_v44  ;;  %v2879_v44 = vld [vmem:[%s3491_s22 + $0x2c] sm:$0xf0] }
 0x88c   : > { %v2651_v5 = vld [vmem:[%s3491_s22 + $0x80] sm:$0xf]  ;;  %v2604_v46 = vor.u32 %v2879_v44, %v2603_v43  ;;  %v2918_v43 = vld [vmem:[%s3493_s11 + $0x68] sm:$0xff] }
 0x88d   : > { %1803 = vmatpush.bf16.msra.mxu3 %v2676_v61  ;;  %v2595_v61 = vld [vmem:[%s3491_s22 + $0x8] sm:$0xf] }
 0x88e   : > { %v2926_v44 = vld [vmem:[%s3493_s11 + $0xa8] sm:$0xff] }
 0x88f   : > { %1775 = vmatpush.bf16.msra.mxu1 %v2668_v57  ;;  %v2875_v57 = vld [vmem:[%s3491_s22 + $0xc] sm:$0xf0] }
 0x890   : > { %v2588_v59 = vor.u32 %v2875_v57, %v2587_v54  ;;  %v2906_v54 = vld [vmem:[%s3493_s11 + $0x8] sm:$0xff]  ;;  %v2923_v57 = vld [vmem:[%s3493_s11 + $0x90] sm:$0xff] }
 0x8a4   : > { %v1448_v9 = vpop.f32.mrf.mxu0 }
 0x8a5   : > { %v1452_v10 = vpack.c.bf16 %v1448_v9, %v1448_v9  ;;  %v2891_v9 = vld [vmem:[%s3491_s22 + $0x8c] sm:$0xf0] }
 0x8a7   : > { %2569 = vmatmul.msk.bf16.vlgmr.msrb.gmra.mxu1 %vm808_vm0, %v1452_v10  ;;  %v2889_v10 = vld [vmem:[%s3491_s22 + $0x84] sm:$0xf] }
 0x8ac   : > { %v1450_v11 = vpop.f32.mrf.mxu0 }
 0x8ad   : > { %v2652_v11 = vor.u32 %v2891_v9, %v2651_v5 }
 0x8af   : > { %1776 = vmatpush.bf16.msra.mxu1 %v2652_v11 }
 0x903   : > { %v1364_v17 = vpop.f32.mrf.mxu1 }
 0x904   : > { %v1393_v20 = vadd.f32 %v3700_v3, %v1364_v17  ;;  %v2701_v3 = vld [vmem:[%s3491_s22 + $0xf0] sm:$0xf0]  ;;  %v2892_v17 = vld [vmem:[%s3491_s22 + $0x94] sm:$0xf0] }
 0x905   : > { %v2704_v34 = vor.u32 %v2901_v31, %v2701_v3  ;;  %v2886_v31 = vld [vmem:[%s3491_s22 + $0x6c] sm:$0xf] }
 0x906   : > { %v2648_v3 = vor.u32 %v2886_v31, %v2645_v32 }
 0x907   : > { %v1538_v25 = vpop.f32.mrf.mxu3  ;;  %1787 = vmatpush.bf16.msra.mxu2 %v2704_v34  ;;  %v2881_v34 = vld [vmem:[%s3491_s22 + $0x44] sm:$0xf] }
 0x908   : > { %v1542_v7 = vpack.c.bf16 %v1538_v25, %v1538_v25  ;;  %v2656_v25 = vor.u32 %v2889_v10, %v2653_v12 }
 0x90a   : > { %2584 = vmatmul.msk.bf16.vlgmr.msra.gmra.mxu0 %vm808_vm0, %v1542_v7  ;;  %v2660_v7 = vor.u32 %v2892_v17, %v2659_v16 }
 0x90b   : > { %v1366_v18 = vpop.f32.mrf.mxu1  ;;  %1788 = vmatpush.bf16.msra.mxu2 %v2688_v48  ;;  %v2611_v48 = vld [vmem:[%s3491_s22 + $0x28] sm:$0xf] }
 0x90c   : > { %v2890_v18 = vld [vmem:[%s3491_s22 + $0x8c] sm:$0xf]  ;;  %1804 = vmatpush.bf16.msra.mxu3 %v2660_v7  ;;  %v2612_v51 = vor.u32 %v2880_v49, %v2611_v48  ;;  %v2925_v48 = vld [vmem:[%s3493_s11 + $0xa0] sm:$0xff]  ;;  %v2907_v49 = vld [vmem:[%s3493_s11 + $0x10] sm:$0xff] }
 0x90f   : > { %v1540_v19 = vpop.f32.mrf.mxu3  ;;  %1789 = vmatpush.bf16.msra.mxu2 %v2672_v60  ;;  %v2592_v60 = vor.u32 %v2873_v15, %v2589_v58  ;;  %v2905_v15 = vld [vmem:[%s3493_s11] sm:$0xff] }
 0x910   : > { %v2661_v19 = vld [vmem:[%s3491_s22 + $0x98] sm:$0xf0]  ;;  %v2929_v58 = vld [vmem:[%s3493_s11 + $0xc0] sm:$0xff] }
 0x913   : > { %1790 = vmatpush.bf16.msra.mxu2 %v2656_v25 }
 0x924   : > { %v1481_v21 = vpop.f32.mrf.mxu1 }
 0x925   : > { %v1485_v22 = vadd.f32 %v1481_v21, %v1393_v20  ;;  %v3778_v20 = vadd.f32 1e-12, %v1192_v35  ;;  %v2664_v21 = vor.u32 %v2890_v18, %v2661_v19  ;;  %v2596_v35 = vor.u32 %v2876_v63, %v2595_v61  ;;  %v2914_v61 = vld [vmem:[%s3493_s11 + $0x48] sm:$0xff] }
 0x926   : > { %v2922_v63 = vld [vmem:[%s3493_s11 + $0x88] sm:$0xff] }
 0x927   : > { %3066 = vrsqrt.f32 %v3778_v20  ;;  %vm1200_vm5 = vweird.f32 %v3778_v20 }
 0x92c   : > { %v1483_v6 = vpop.f32.mrf.mxu1 }
 0x92d   : > { %v2887_v6 = vld [vmem:[%s3491_s22 + $0x6c] sm:$0xf0]  ;;  %v3067_v55 = vpop.eup %3066 }
 0x92e   : > { %v1195_v5 = vmul.f32 %v3067_v55, %v3778_v20  ;;  %vm1201_vm4 = vweird.f32 %v3067_v55 }
 0x92f   : > { %vm1202_vm6 = vmor %vm1200_vm5, %vm1201_vm4 }
 0x930   : > { %v1196_v10 = vmul.f32 %v3067_v55, %v1195_v5 }
 0x932   : > { %v1197_v17 = vmul.f32 0.5, %v1196_v10 }
 0x934   : > { %v1198_v25 = vsub.f32 1.5, %v1197_v17 }
 0x936   : > { %v1199_v18 = vmul.f32 %v3067_v55, %v1198_v25 }
 0x987   : > { %v1571_v23 = vpop.f32.mrf.mxu0 }
 0x988   : > { %v1575_v24 = vadd.f32 %v1571_v23, %v1485_v22  ;;  %v2635_v22 = vld [vmem:[%s3491_s22 + $0x60] sm:$0xf]  ;;  %v2885_v23 = vld [vmem:[%s3491_s22 + $0x64] sm:$0xf] }
 0x98a   : > { %v1576_v26 = vadd.f32 %v1575_v24, %v1175_v8  ;;  %v2636_v24 = vor.u32 %v2887_v6, %v2635_v22  ;;  %v1203_v22 = vsel %vm1202_vm6, %v3067_v55, %v1199_v18  ;;  %v2930_v55 = vld [vmem:[%s3493_s11 + $0xc8] sm:$0xff] }
 0x98c   : > { %v1577_v14 = vadd.f32 %v1576_v26, %v3562_v1  ;;  %v2712_v1 = vor.u32 %v2902_v37, %v2709_v13  ;;  %v2637_v26 = vld [vmem:[%s3491_s22 + $0x70] sm:$0xf0]  ;;  %1777 = vmatpush.bf16.msra.mxu1 %v2636_v24  ;;  %v2627_v13 = vld [vmem:[%s3491_s22 + $0x48] sm:$0xf]  ;;  %v1204_v24 = vmul.f32 %v1203_v22, %v3716_v41 }
 0x98d   : > { %v2640_v62 = vor.u32 %v2885_v23, %v2637_v26  ;;  %v2621_v37 = vld [vmem:[%s3491_s22 + $0x50] sm:$0xf0]  ;;  %v3818_v26 = vld [vmem:[%s3504_s19] sm:$0xff] }
 0x98e   : > { %1578 = vadd.xlane.f32.xlu0 %v1577_v14  ;;  %1815 = vmatpush.bf16.msrb.mxu0 %v2712_v1  ;;  %v2884_v1 = vld [vmem:[%s3491_s22 + $0x54] sm:$0xf0]  ;;  %v1207_v31 = vperm.slane %v3818_v26, 5 }
 0x98f   : > { %v1573_v29 = vpop.f32.mrf.mxu0  ;;  %1791 = vmatpush.bf16.msra.mxu2 %v2640_v62 }
 0x990   : > { %v2888_v29 = vld [vmem:[%s3491_s22 + $0x74] sm:$0xf0]  ;;  %1778 = vmatpush.bf16.msra.mxu1 %v2620_v4  ;;  %v2935_v4 = vld [vmem:[%s3493_s11 + $0xf0] sm:$0xff] }
 0x992   : > { %1816 = vmatpush.bf16.msrb.mxu0 %v2696_v52  ;;  %v2878_v52 = vld [vmem:[%s3491_s22 + $0x2c] sm:$0xf] }
 0x993   : > { %v2616_v56 = vor.u32 %v2878_v52, %v2613_v53  ;;  %v2924_v52 = vld [vmem:[%s3493_s11 + $0x98] sm:$0xff]  ;;  %v3852_v53 = vld [vmem:[%s3509_s10] sm:$0xf] }
 0x994   : > { %1779 = vmatpush.bf16.msra.mxu1 %v2604_v46  ;;  %v2932_v46 = vld [vmem:[%s3493_s11 + $0xd8] sm:$0xff]  ;;  %v1606_v10 = vperm.slane %v3852_v53, 1  ;;  %v1607_v17 = vperm.slane %v3852_v53, 2 }
 0x996   : > { %1817 = vmatpush.bf16.msrb.mxu0 %v2680_v2  ;;  %v2597_v2 = vld [vmem:[%s3491_s22 + $0x18] sm:$0xf0] }
 0x997   : > { %v2600_v9 = vor.u32 %v2874_v0, %v2597_v2 }
 0x998   : > { %1780 = vmatpush.bf16.msra.mxu1 %v2588_v59  ;;  %v1605_v59 = vperm.slane %v3852_v53, 0 }
 0x99a   : > { %1818 = vmatpush.bf16.msrb.mxu0 %v2664_v21 }
 0x99e   : > { %1819 = vmatpush.bf16.msrb.mxu0 %v2648_v3 }
 0xa01   : > { %v1579_v8 = vpop.xlane.xlu0 %1578 }
 0xa02   : > { %v1580_v38 = vmul.f32 %v1579_v8, %v3713_v36  ;;  %v2624_v8 = vor.u32 %v2881_v34, %v2621_v37  ;;  %v2911_v34 = vld [vmem:[%s3493_s11 + $0x30] sm:$0xff]  ;;  %v2920_v37 = vld [vmem:[%s3493_s11 + $0x78] sm:$0xff] }
 0xa04   : > { %v3749_v39 = vsub.f32 %v1577_v14, %v1580_v38  ;;  %v2643_v14 = vld [vmem:[%s3491_s22 + $0x68] sm:$0xf]  ;;  %v2628_v38 = vor.u32 %v2884_v1, %v2627_v13  ;;  %1792 = vmatpush.bf16.msra.mxu2 %v2624_v8  ;;  %v2928_v13 = vld [vmem:[%s3493_s11 + $0xb8] sm:$0xff] }
 0xa05   : > { %v2644_v30 = vor.u32 %v2888_v29, %v2643_v14  ;;  %v1205_v14 = vperm.slane %v3818_v26, 4  ;;  %v2910_v1 = vld [vmem:[%s3493_s11 + $0x28] sm:$0xff] }
 0xa06   : > { %v1582_v40 = vmul.f32 %v3749_v39, %v3749_v39  ;;  %v2934_v8 = vld [vmem:[%s3493_s11 + $0xe8] sm:$0xff] }
 0xa07   : > { %1805 = vmatpush.bf16.msra.mxu3 %v2644_v30  ;;  %v1206_v30 = vmul.f32 %v1205_v14, %v1204_v24 }
 0xa08   : > { %1583 = vadd.xlane.f32.xlu2 %v1582_v40  ;;  %v2882_v40 = vld [vmem:[%s3491_s22 + $0x4c] sm:$0xf]  ;;  %1793 = vmatpush.bf16.msra.mxu2 %v2608_v50  ;;  %v2931_v50 = vld [vmem:[%s3493_s11 + $0xd0] sm:$0xff]  ;;  %s2209_s22 = sshll.u32 %s3297_s13, 4  ;;  %s2210_s22 = int_to_ptr.vmem [resolvable:$true] %s2209_s22 }
 0xa09   : > { %v2632_v42 = vor.u32 %v2882_v40, %v2629_v27  ;;  %v3823_v41 = vadd.f32 %v1207_v31, %v1206_v30  ;;  %v2927_v40 = vld [vmem:[%s3493_s11 + $0xb0] sm:$0xff]  ;;  %v2909_v27 = vld [vmem:[%s3493_s11 + $0x20] sm:$0xff] }
 0xa0b   : > { %1806 = vmatpush.bf16.msra.mxu3 %v2628_v38  ;;  %1820 = vmatpush.bf16.msrb.mxu0 %v2632_v42  ;;  %v2919_v38 = vld [vmem:[%s3493_s11 + $0x70] sm:$0xff]  ;;  %v2933_v42 = vld [vmem:[%s3493_s11 + $0xe0] sm:$0xff] }
 0xa0c   : > { %1794 = vmatpush.bf16.msra.mxu2 %v2592_v60  ;;  %v1608_v60 = vperm.slane %v3852_v53, 3 }
 0xa0f   : > { %1807 = vmatpush.bf16.msra.mxu3 %v2612_v51  ;;  %1821 = vmatpush.bf16.msrb.mxu0 %v2616_v56  ;;  %v2916_v51 = vld [vmem:[%s3493_s11 + $0x58] sm:$0xff]  ;;  %v2915_v56 = vld [vmem:[%s3493_s11 + $0x50] sm:$0xff] }
 0xa10   : > { %2112 = vmatpush.bf16.msrb.mxu2 %v2920_v37 }
 0xa13   : > { %1808 = vmatpush.bf16.msra.mxu3 %v2596_v35  ;;  %1822 = vmatpush.bf16.msrb.mxu0 %v2600_v9 }
 0xa14   : > { %2113 = vmatpush.bf16.msrb.mxu2 %v2919_v38 }
 0xa17   : > { %2140 = vmatpush.bf16.msra.mxu0 %v2936_v33  ;;  %2126 = vmatpush.bf16.msrb.mxu3 %v2928_v13 }
 0xa18   : > { %2114 = vmatpush.bf16.msrb.mxu2 %v2918_v43 }
 0xa1b   : > { %2141 = vmatpush.bf16.msra.mxu0 %v2935_v4  ;;  %2127 = vmatpush.bf16.msrb.mxu3 %v2927_v40 }
 0xa1c   : > { %2115 = vmatpush.bf16.msrb.mxu2 %v2917_v47 }
 0xa1f   : > { %2142 = vmatpush.bf16.msra.mxu0 %v2934_v8  ;;  %2128 = vmatpush.bf16.msrb.mxu3 %v2926_v44 }
 0xa20   : > { %2116 = vmatpush.bf16.msrb.mxu2 %v2916_v51 }
 0xa23   : > { %2143 = vmatpush.bf16.msra.mxu0 %v2933_v42  ;;  %2129 = vmatpush.bf16.msrb.mxu3 %v2925_v48 }
 0xa24   : > { %2117 = vmatpush.bf16.msrb.mxu2 %v2915_v56 }
 0xa27   : > { %2144 = vmatpush.bf16.msra.mxu0 %v2932_v46  ;;  %2130 = vmatpush.bf16.msrb.mxu3 %v2924_v52 }
 0xa28   : > { %2118 = vmatpush.bf16.msrb.mxu2 %v2914_v61 }
 0xa2b   : > { %2145 = vmatpush.bf16.msra.mxu0 %v2931_v50  ;;  %2131 = vmatpush.bf16.msrb.mxu3 %v2923_v57 }
 0xa2f   : > { %2146 = vmatpush.bf16.msra.mxu0 %v2930_v55  ;;  %2132 = vmatpush.bf16.msrb.mxu3 %v2922_v63 }
 0xa33   : > { %2147 = vmatpush.bf16.msra.mxu0 %v2929_v58 }
 0xa7b   : > { %v1584_v11 = vpop.xlane.xlu2 %1583 }
 0xa7c   : > { %v1585_v12 = vmul.f32 %v1584_v11, %v3713_v36  ;;  %v2913_v11 = vld [vmem:[%s3493_s11 + $0x40] sm:$0xff] }
 0xa7d   : > { %2119 = vmatpush.bf16.msrb.mxu2 %v2913_v11 }
 0xa7e   : > { %v1586_v16 = vadd.f32 1e-12, %v1585_v12  ;;  %v2921_v12 = vld [vmem:[%s3493_s11 + $0x80] sm:$0xff] }
 0xa7f   : > { %2133 = vmatpush.bf16.msrb.mxu3 %v2921_v12 }
 0xa80   : > { %3068 = vrsqrt.f32 %v1586_v16  ;;  %vm1593_vm8 = vweird.f32 %v1586_v16 }
 0xa86   : > { %v3069_v7 = vpop.eup %3068 }
 0xa87   : > { %v1588_v19 = vmul.f32 %v3069_v7, %v1586_v16  ;;  %vm1594_vm7 = vweird.f32 %v3069_v7 }
 0xa88   : > { %vm1595_vm9 = vmor %vm1593_vm8, %vm1594_vm7 }
 0xa89   : > { %v1589_v21 = vmul.f32 %v3069_v7, %v1588_v19 }
 0xa8b   : > { %v1590_v6 = vmul.f32 0.5, %v1589_v21 }
 0xa8d   : > { %v1591_v23 = vsub.f32 1.5, %v1590_v6 }
 0xa8f   : > { %v1592_v29 = vmul.f32 %v3069_v7, %v1591_v23 }
 0xa91   : > { %v1596_v62 = vsel %vm1595_vm9, %v3069_v7, %v1592_v29 }
 0xa92   : > { %v1597_v20 = vmul.f32 %v1596_v62, %v3749_v39  ;;  %v2912_v39 = vld [vmem:[%s3493_s11 + $0x38] sm:$0xff] }
 0xa93   : > { %2098 = vmatpush.bf16.msrb.mxu1 %v2912_v39 }
 0xa94   : > { %v1598_v32 = vmul.f32 %v1597_v20, %v1205_v14 }
 0xa96   : > { %v3825_v3 = vadd.f32 %v1598_v32, %v1207_v31 }
 0xa97   : > { %2099 = vmatpush.bf16.msrb.mxu1 %v2911_v34 }
 0xa98   : > { %v1603_v28 = vpack.c.bf16 %v3825_v3, %v3823_v41 }
 0xa9a   : > { %1781 = vmatmul.bf16.vlgmr.msra.gmra.mxu1 %v1603_v28  ;;  %1795 = vmatmul.bf16.vlgmr.msra.gmra.mxu2 %v1603_v28 }
 0xa9b   : > { %1809 = vmatmul.bf16.vlgmr.msra.gmra.mxu3 %v1603_v28  ;;  %1823 = vmatmul.bf16.vlgmr.msrb.gmra.mxu0 %v1603_v28 }
 0xa9c   : > { %2100 = vmatpush.bf16.msrb.mxu1 %v2910_v1 }
 0xaa0   : > { %2101 = vmatpush.bf16.msrb.mxu1 %v2909_v27 }
 0xaa4   : > { %2102 = vmatpush.bf16.msrb.mxu1 %v2908_v45 }
 0xaa8   : > { %2103 = vmatpush.bf16.msrb.mxu1 %v2907_v49 }
 0xaac   : > { %2104 = vmatpush.bf16.msrb.mxu1 %v2906_v54 }
 0xab0   : > { %2105 = vmatpush.bf16.msrb.mxu1 %v2905_v15 }
 0xb17   : > { %v1782_v0 = vpop.f32.mrf.mxu1 }
 0xb18   : > { %v3864_v35 = vadd.f32 %v1782_v0, %v1605_v59  ;;  %v1824_v2 = vpop.f32.mrf.mxu0 }
 0xb19   : > { %v3866_v5 = vadd.f32 %v1824_v2, %v1608_v60 }
 0xb1a   : > { %v1837_v9 = vmul.f32 0.044715, %v3864_v35 }
 0xb1b   : > { %v1840_v16 = vmul.f32 0.044715, %v3866_v5 }
 0xb1c   : > { %v1845_v25 = vmul.f32 %v1837_v9, %v3864_v35 }
 0xb1d   : > { %v1848_v7 = vmul.f32 %v1840_v16, %v3866_v5  ;;  %v1796_v18 = vpop.f32.mrf.mxu2  ;;  %v1829_v16 = vmul.f32 0.5, %v3864_v35 }
 0xb1e   : > { %v1853_v19 = vmul.f32 %v1845_v25, %v3864_v35  ;;  %v3877_v21 = vadd.f32 %v1796_v18, %v1606_v10  ;;  %v1810_v22 = vpop.f32.mrf.mxu3  ;;  %v1832_v18 = vmul.f32 0.5, %v3866_v5 }
 0xb1f   : > { %v1856_v6 = vmul.f32 %v1848_v7, %v3866_v5  ;;  %v3880_v23 = vadd.f32 %v1810_v22, %v1607_v17  ;;  %v1784_v24 = vpop.f32.mrf.mxu1 }
 0xb20   : > { %v1861_v14 = vadd.f32 %v1853_v19, %v3864_v35  ;;  %v1838_v29 = vmul.f32 0.044715, %v3877_v21  ;;  %v1785_v62 = vadd.f32 %v1784_v24, %v1605_v59  ;;  %v1826_v20 = vpop.f32.mrf.mxu0  ;;  %v1830_v35 = vmul.f32 0.5, %v3877_v21 }
 0xb21   : > { %v1864_v30 = vadd.f32 %v1856_v6, %v3866_v5  ;;  %v1839_v31 = vmul.f32 0.044715, %v3880_v23  ;;  %v1827_v32 = vadd.f32 %v1826_v20, %v1608_v60  ;;  %v1831_v5 = vmul.f32 0.5, %v3880_v23 }
 0xb22   : > { %v1846_v28 = vmul.f32 %v1838_v29, %v3877_v21  ;;  %v1841_v39 = vmul.f32 0.044715, %v1785_v62  ;;  %v1869_v4 = vmul.f32 0.7978846, %v1861_v14 }
 0xb23   : > { %v1847_v33 = vmul.f32 %v1839_v31, %v3880_v23  ;;  %v1844_v34 = vmul.f32 0.044715, %v1827_v32  ;;  %v1872_v1 = vmul.f32 0.7978846, %v1864_v30  ;;  %v1836_v19 = vmul.f32 0.5, %v1827_v32 }
 0xb24   : > { %v1854_v37 = vmul.f32 %v1846_v28, %v3877_v21  ;;  %v1849_v13 = vmul.f32 %v1841_v39, %v1785_v62  ;;  %3070 = vtanh.f32 %v1869_v4 }
 0xb25   : > { %v1855_v8 = vmul.f32 %v1847_v33, %v3880_v23  ;;  %v1852_v38 = vmul.f32 %v1844_v34, %v1827_v32  ;;  %v1798_v40 = vpop.f32.mrf.mxu2  ;;  %3072 = vtanh.f32 %v1872_v1 }
 0xb26   : > { %v1862_v27 = vadd.f32 %v1854_v37, %v3877_v21  ;;  %v1857_v42 = vmul.f32 %v1849_v13, %v1785_v62  ;;  %v1799_v43 = vadd.f32 %v1798_v40, %v1606_v10  ;;  %v1812_v44 = vpop.f32.mrf.mxu3 }
 0xb27   : > { %v1863_v45 = vadd.f32 %v1855_v8, %v3880_v23  ;;  %v1860_v46 = vmul.f32 %v1852_v38, %v1827_v32  ;;  %v1813_v47 = vadd.f32 %v1812_v44, %v1607_v17  ;;  %v1833_v17 = vmul.f32 0.5, %v1785_v62 }
 0xb28   : > { %v1865_v48 = vadd.f32 %v1857_v42, %v1785_v62  ;;  %v1842_v49 = vmul.f32 0.044715, %v1799_v43  ;;  %v1870_v52 = vmul.f32 0.7978846, %v1862_v27  ;;  %v1834_v62 = vmul.f32 0.5, %v1799_v43 }
 0xb29   : > { %v1868_v50 = vadd.f32 %v1860_v46, %v1827_v32  ;;  %v1843_v51 = vmul.f32 0.044715, %v1813_v47  ;;  %v1871_v55 = vmul.f32 0.7978846, %v1863_v45  ;;  %v1835_v32 = vmul.f32 0.5, %v1813_v47 }
 0xb2a   : > { %v1873_v53 = vmul.f32 0.7978846, %v1865_v48  ;;  %v1850_v54 = vmul.f32 %v1842_v49, %v1799_v43  ;;  %v3071_v59 = vpop.eup %3070  ;;  %v1905_v44 = vperm.slane %v3818_v26, 6 }
 0xb2b   : > { %v1876_v56 = vmul.f32 0.7978846, %v1868_v50  ;;  %v1851_v57 = vmul.f32 %v1843_v51, %v1813_v47  ;;  %v3073_v61 = vpop.eup %3072  ;;  %v1885_v9 = vadd.f32 1.0, %v3071_v59 }
 0xb2c   : > { %v1858_v15 = vmul.f32 %v1850_v54, %v1799_v43  ;;  %3074 = vtanh.f32 %v1873_v53  ;;  %v1888_v11 = vadd.f32 1.0, %v3073_v61 }
 0xb2d   : > { %v1859_v58 = vmul.f32 %v1851_v57, %v1813_v47  ;;  %3076 = vtanh.f32 %v1876_v56  ;;  %v1893_v24 = vmul.f32 %v1885_v9, %v1829_v16 }
 0xb2e   : > { %v1866_v60 = vadd.f32 %v1858_v15, %v1799_v43  ;;  %3078 = vtanh.f32 %v1870_v52  ;;  %v1896_v29 = vmul.f32 %v1888_v11, %v1832_v18 }
 0xb2f   : > { %v1867_v63 = vadd.f32 %v1859_v58, %v1813_v47  ;;  %3080 = vtanh.f32 %v1871_v55 }
 0xb30   : > { %v1874_v0 = vmul.f32 0.7978846, %v1866_v60 }
 0xb31   : > { %v1875_v2 = vmul.f32 0.7978846, %v1867_v63 }
 0xb32   : > { %v3075_v10 = vpop.eup %3074  ;;  %3082 = vtanh.f32 %v1874_v0 }
 0xb33   : > { %v3077_v12 = vpop.eup %3076  ;;  %v1889_v25 = vadd.f32 1.0, %v3075_v10  ;;  %3084 = vtanh.f32 %v1875_v2 }
 0xb34   : > { %v3079_v7 = vpop.eup %3078  ;;  %v1892_v22 = vadd.f32 1.0, %v3077_v12 }
 0xb35   : > { %v3081_v6 = vpop.eup %3080  ;;  %v1897_v14 = vmul.f32 %v1889_v25, %v1833_v17  ;;  %v1886_v31 = vadd.f32 1.0, %v3079_v7 }
 0xb36   : > { %v1900_v20 = vmul.f32 %v1892_v22, %v1836_v19  ;;  %v1887_v33 = vadd.f32 1.0, %v3081_v6 }
 0xb37   : > { %v1901_v30 = vpack.c.bf16 %v1897_v14, %v1893_v24  ;;  %v1894_v13 = vmul.f32 %v1886_v31, %v1830_v35  ;;  %v2196_v14 = vperm.slane %v3818_v26, 7 }
 0xb38   : > { %v3083_v28 = vpop.eup %3082  ;;  %v1904_v39 = vpack.c.bf16 %v1900_v20, %v1896_v29  ;;  %v1895_v8 = vmul.f32 %v1887_v33, %v1831_v5 }
 0xb39   : > { %v3085_v34 = vpop.eup %3084  ;;  %2106 = vmatmul.bf16.vlgmr.msrb.gmra.mxu1 %v1901_v30  ;;  %v1890_v4 = vadd.f32 1.0, %v3083_v28 }
 0xb3a   : > { %2148 = vmatmul.bf16.vlgmr.msra.gmra.mxu0 %v1904_v39  ;;  %v1891_v37 = vadd.f32 1.0, %v3085_v34 }
 0xb3b   : > { %v1898_v1 = vmul.f32 %v1890_v4, %v1834_v62 }
 0xb3c   : > { %v1899_v38 = vmul.f32 %v1891_v37, %v1835_v32 }
 0xb3d   : > { %v1902_v40 = vpack.c.bf16 %v1898_v1, %v1894_v13 }
 0xb3e   : > { %v1903_v27 = vpack.c.bf16 %v1899_v38, %v1895_v8 }
 0xb3f   : > { %2120 = vmatmul.bf16.vlgmr.msrb.gmra.mxu2 %v1902_v40 }
 0xb40   : > { %2134 = vmatmul.bf16.vlgmr.msrb.gmra.mxu3 %v1903_v27 }
 0xbb6   : > { %v2107_v42 = vpop.f32.mrf.mxu1 }
 0xbb7   : > { %v2108_v45 = vadd.f32 %v2107_v42, %v1905_v44  ;;  %v2149_v48 = vpop.f32.mrf.mxu0 }
 0xbbe   : > { %v2109_v23 = vpop.f32.mrf.mxu1 }
 0xbbf   : > { %v2110_v50 = vadd.f32 %v2109_v23, %v1905_v44  ;;  %v2151_v56 = vpop.f32.mrf.mxu0 }
 0xbc2   : > { %v2121_v21 = vpop.f32.mrf.mxu2 }
 0xbc3   : > { %v2122_v43 = vadd.f32 %v2121_v21, %v2108_v45  ;;  %v2135_v46 = vpop.f32.mrf.mxu3 }
 0xbc5   : > { %v2136_v49 = vadd.f32 %v2135_v46, %v2122_v43 }
 0xbc7   : > { %v2150_v47 = vadd.f32 %v2149_v48, %v2136_v49 }
 0xbc9   : > { %v2154_v51 = vadd.f32 %v2150_v47, %v3823_v41 }
 0xbca   : > { %v2123_v52 = vpop.f32.mrf.mxu2 }
 0xbcb   : > { %v2124_v53 = vadd.f32 %v2123_v52, %v2110_v50  ;;  %2156 = vadd.xlane.f32.xlu0 %v2154_v51  ;;  %v2137_v54 = vpop.f32.mrf.mxu3 }
 0xbcd   : > { %v2138_v55 = vadd.f32 %v2137_v54, %v2124_v53 }
 0xbcf   : > { %v2152_v57 = vadd.f32 %v2151_v56, %v2138_v55 }
 0xbd1   : > { %v2155_v15 = vadd.f32 %v2152_v57, %v3825_v3 }
 0xbd3   : > { %2158 = vadd.xlane.f32.xlu2 %v2155_v15 }
 0xc3e   : > { %v2157_v58 = vpop.xlane.xlu0 %2156 }
 0xc3f   : > { %v2160_v59 = vmul.f32 %v2157_v58, %v3713_v36 }
 0xc41   : > { %v2162_v60 = vsub.f32 %v2154_v51, %v2160_v59 }
 0xc43   : > { %v2164_v61 = vmul.f32 %v2162_v60, %v2162_v60 }
 0xc45   : > { %2166 = vadd.xlane.f32.xlu0 %v2164_v61 }
 0xc46   : > { %v2159_v63 = vpop.xlane.xlu2 %2158 }
 0xc47   : > { %v2161_v0 = vmul.f32 %v2159_v63, %v3713_v36 }
 0xc49   : > { %v2163_v41 = vsub.f32 %v2155_v15, %v2161_v0 }
 0xc4b   : > { %v2165_v2 = vmul.f32 %v2163_v41, %v2163_v41 }
 0xc4d   : > { %2168 = vadd.xlane.f32.xlu1 %v2165_v2 }
 0xcb8   : > { %v2167_v9 = vpop.xlane.xlu0 %2166 }
 0xcb9   : > { %v2170_v10 = vmul.f32 %v2167_v9, %v3713_v36 }
 0xcbb   : > { %v2172_v11 = vadd.f32 1e-12, %v2170_v10 }
 0xcbd   : > { %3086 = vrsqrt.f32 %v2172_v11  ;;  %vm2180_vm11 = vweird.f32 %v2172_v11 }
 0xcc0   : > { %v2169_v12 = vpop.xlane.xlu1 %2168 }
 0xcc1   : > { %v2171_v3 = vmul.f32 %v2169_v12, %v3713_v36  ;;  %v3031_v36 = vld [vmem:[%s3504_s19 + $0x8] ss:$0 sm:$0xff]  ;;  %s3299_s19 = smov 8  }
 0xcc3   : > { %v3087_v16 = vpop.eup %3086  ;;  %v2173_v17 = vadd.f32 1e-12, %v2171_v3 }
 0xcc4   : > { %v2175_v25 = vmul.f32 %v3087_v16, %v2172_v11  ;;  %vm2181_vm10 = vweird.f32 %v3087_v16 }
 0xcc5   : > { %3088 = vrsqrt.f32 %v2173_v17  ;;  %vm2182_vm12 = vmor %vm2180_vm11, %vm2181_vm10  ;;  %vm2190_vm14 = vweird.f32 %v2173_v17 }
 0xcc6   : > { %v2176_v7 = vmul.f32 %v3087_v16, %v2175_v25 }
 0xcc8   : > { %v2177_v18 = vmul.f32 0.5, %v2176_v7 }
 0xcca   : > { %v2178_v19 = vsub.f32 1.5, %v2177_v18 }
 0xccb   : > { %v3089_v22 = vpop.eup %3088 }
 0xccc   : > { %v2179_v6 = vmul.f32 %v3087_v16, %v2178_v19  ;;  %v2185_v24 = vmul.f32 %v3089_v22, %v2173_v17  ;;  %vm2191_vm13 = vweird.f32 %v3089_v22 }
 0xccd   : > { %vm2192_vm15 = vmor %vm2190_vm14, %vm2191_vm13 }
 0xcce   : > { %v2183_v29 = vsel %vm2182_vm12, %v3087_v16, %v2179_v6  ;;  %v2186_v20 = vmul.f32 %v3089_v22, %v2185_v24 }
 0xccf   : > { %v2194_v30 = vmul.f32 %v2183_v29, %v2162_v60 }
 0xcd0   : > { %v2187_v31 = vmul.f32 0.5, %v2186_v20 }
 0xcd1   : > { %v2197_v28 = vmul.f32 %v2196_v14, %v2194_v30 }
 0xcd2   : > { %v2188_v39 = vsub.f32 1.5, %v2187_v31 }
 0xcd3   : > { %v2200_v33 = vadd.f32 %v3031_v36, %v2197_v28 }
 0xcd4   : > { %v2189_v34 = vmul.f32 %v3089_v22, %v2188_v39 }
 0xcd5   : > { %2202 = vst [vmem:[#allocation11] sm:$0xff] %v2200_v33 }
 0xcd6   : > { %v2193_v35 = vsel %vm2192_vm15, %v3089_v22, %v2189_v34 }
 0xcd7   : > { %v2195_v62 = vmul.f32 %v2193_v35, %v2163_v41 }
 0xcd9   : > { %v2198_v26 = vmul.f32 %v2196_v14, %v2195_v62 }
 0xcdb   : > { %v2201_v4 = vadd.f32 %v3031_v36, %v2198_v26 }
 0xcdd   : > { %2203 = vst [vmem:[#allocation11 + $0x8] sm:$0xff] %v2201_v4 }
 0xcde   : > { %2965 = dma.vmem_to_hbm [thread:$0]  (%p2982_p7), %s2210_s22, 256, %s2212_s12, [#allocation5], %s3298_s29, %s3298_s29, %s3299_s19  }
 0xcdf   : > { %3268 = dma.done.wait (%p2982_p7), [#allocation5], 256  }
 0xce0   : > { %3270 = vsyncadd (%p2982_p7), [#allocation5], 4294967040 }
 0xce1 PF: > { %s3946_s30 = sld [smem:[#allocation17_spill]]  ;;  %s3949_s27 = smov %s3277_s28 }
 0xce2   : > { %s3947_s15 = sld [smem:[#allocation16_spill]] }
 0xce3   : > { %s3948_s29 = sld [smem:[#allocation18_spill]] }
 0xce7   : > { %p25_p5 = scmp.ge.s32.totalorder %s3946_s30, 4  }
 0xce8   : > { %s3950_s28 = smov %s3947_s15 }
 0xce9   :  { %27 = sbr.rel (!%p25_p5) target bundleno = 10 (0xa), region = 140 }
 0xcee   :  { %2228 = vsyncpa [#allocation4], 1 }
 0xcef   :  { %2230 = vsyncpa [#allocation4 + $0x1], 1 }
 0xcf0   :  { %2231 = vsyncpa [#allocation7], 1 }
 0xcf1   :  { %2233 = vsyncpa [#allocation7 + $0x1], 1 }
 0xcf2   :  { %2234 = vsyncpa [#allocation10], 1 }
 0xcf3   :  { %2236 = vsyncpa [#allocation10 + $0x1], 1 }
 0xcf4   :  { %2237 = vsyncpa [#allocation5], 1 }
 0xcf5   :  { %2239 = vsyncpa [#allocation5 + $0x1], 1 }

</bundles_post_ra>
